<compile_context>
chip_gen: v5e
topology: v5e:2x2
jax: 0.10.0
libtpu: 0.0.40
codegen_flags: <defaults>
</compile_context>

<pallas_src>
import math
import jax
import jax.numpy as jnp
from jax import lax
from jax.experimental import pallas as pl
from jax.experimental.pallas import tpu as pltpu

B, T, I, H, O = 2, 8, 32, 32, 16     # batch, seq, input_size, hidden_size, output_size
OP = 128                             # lane-dense padded output width (O <= OP)


def bilstm_kernel(xm_ref,    # (T*B, 2I)  time-major stacked input [x_t | x_{T-1-t}]
                  wi_ref,    # (2I, 8H)   block-diagonal input weights, gate-major
                  b_ref,     # (1, 8H)    combined b_ih + b_hh, both directions
                  wh_ref,    # (2H, 8H)   block-diagonal recurrent weights
                  wl_ref,    # (2H, OP)   linear head weights, padded to OP lanes
                  bl_ref,    # (1, OP)    padded linear bias
                  out_ref,   # (T*B, OP)  lane-dense padded output, time-major
                  hs_ref):   # (T*B, 2H)  VMEM scratch: per-time [h_fwd | h_bwd]
    H2 = 2 * H                # width of one gate block (fwd lanes | bwd lanes)

    # Hoisted, off-chain input projection for all timesteps & both directions.
    # Forward-direction gate lanes see x[t]; backward lanes see x[T-1-t]
    # (reversal baked into the stacked input + block-diagonal wi).
    xz = jnp.dot(xm_ref[...], wi_ref[...], preferred_element_type=jnp.float32) + b_ref[...]
    wh = wh_ref[...]          # hoisted recurrent weight load

    c = jnp.zeros((B, H2), jnp.float32)                   # [c_fwd | c_bwd]
    rec = None

    # Fully-unrolled interleaved recurrence: iteration s advances the forward
    # direction at time t=s and the backward direction at time t=T-1-s.
    for s in range(T):
        z = xz[s * B:(s + 1) * B, :]                      # (B, 8H) pre-activations
        if s > 0:
            z = z + rec

        # Gate order [i, f, o, g]: sigmoid only on the 6H sigmoid lanes, tanh
        # only on the 2H g lanes (no full-width dual transcendental + select).
        sig = jax.nn.sigmoid(z[:, :6 * H])
        g_g = jnp.tanh(z[:, 6 * H:])
        i_g = sig[:, 0 * H2:1 * H2]
        f_g = sig[:, 1 * H2:2 * H2]
        o_g = sig[:, 2 * H2:3 * H2]

        c = f_g * c + i_g * g_g
        h = o_g * jnp.tanh(c)                             # [h_fwd(t=s) | h_bwd(t=T-1-s)]

        # Stash h halves at their time-ordered rows (static offsets, off-chain:
        # nothing in the next iteration depends on these stores).
        hs_ref[s * B:(s + 1) * B, 0:H] = h[:, :H]
        hs_ref[(T - 1 - s) * B:(T - s) * B, H:2 * H] = h[:, H:]

        if s < T - 1:                                     # last step's rec is unused
            rec = jnp.dot(h, wh, preferred_element_type=jnp.float32)

    # Deferred, off-chain linear head: one matmul + one full lane-dense store.
    hs = hs_ref[...]                                      # (T*B, 2H) time-ordered
    out_ref[...] = (jnp.dot(hs, wl_ref[...], preferred_element_type=jnp.float32)
                    + bl_ref[...])


def init_params(key):
    """Deterministic params with PyTorch-default shapes/init ranges."""
    ks = jax.random.split(key, 10)
    s_l = 1.0 / math.sqrt(H)
    s_fc = 1.0 / math.sqrt(2 * H)

    def u(k, shape, s):
        return jax.random.uniform(k, shape, jnp.float32, -s, s)

    return {
        # forward direction (PyTorch gate row order i, f, g, o)
        "w_ih_f": u(ks[0], (4 * H, I), s_l), "w_hh_f": u(ks[1], (4 * H, H), s_l),
        "b_ih_f": u(ks[2], (4 * H,), s_l),   "b_hh_f": u(ks[3], (4 * H,), s_l),
        # reverse direction
        "w_ih_b": u(ks[4], (4 * H, I), s_l), "w_hh_b": u(ks[5], (4 * H, H), s_l),
        "b_ih_b": u(ks[6], (4 * H,), s_l),   "b_hh_b": u(ks[7], (4 * H,), s_l),
        # linear head
        "w_lin": u(ks[8], (O, 2 * H), s_fc), "b_lin": u(ks[9], (O,), s_fc),
    }


def pack_params(params):
    """Repack PyTorch-layout weights into the fused kernel layout.

    Runs ONCE outside the per-call jit path.  Kernel gate order is [i, f, o, g]
    (PyTorch stores rows as [i, f, g, o]); each gate block is direction
    interleaved [fwd H | bwd H].
    """
    gate_order = (0, 1, 3, 2)                             # i, f, o, g from i, f, g, o
    f32 = jnp.float32

    # Block-diagonal input weight (2I, 8H): rows 0:I couple the x[t] stream
    # (forward lanes), rows I:2I couple the x[T-1-t] stream (backward lanes).
    zIH = jnp.zeros((I, H), f32)
    cols = []
    for k in gate_order:
        cols.append(jnp.concatenate([params["w_ih_f"][k * H:(k + 1) * H].T, zIH], axis=0))
        cols.append(jnp.concatenate([zIH, params["w_ih_b"][k * H:(k + 1) * H].T], axis=0))
    wi_bd = jnp.concatenate(cols, axis=1)                 # (2I, 8H)

    bf = params["b_ih_f"] + params["b_hh_f"]
    bb = params["b_ih_b"] + params["b_hh_b"]
    b_cat = jnp.concatenate(
        [jnp.concatenate([bf[k * H:(k + 1) * H], bb[k * H:(k + 1) * H]]) for k in gate_order]
    )[None, :]                                            # (1, 8H)

    # Block-diagonal recurrent weight (2H, 8H): rows 0:H couple only h_fwd,
    # rows H:2H only h_bwd.
    zH = jnp.zeros((H, H), f32)
    cols = []
    for k in gate_order:
        cols.append(jnp.concatenate([params["w_hh_f"][k * H:(k + 1) * H].T, zH], axis=0))
        cols.append(jnp.concatenate([zH, params["w_hh_b"][k * H:(k + 1) * H].T], axis=0))
    wh_cat = jnp.concatenate(cols, axis=1)                # (2H, 8H)

    # Linear head, padded to OP lanes (lane-dense output store in the kernel).
    wl_p = jnp.concatenate([params["w_lin"].T,
                            jnp.zeros((2 * H, OP - O), f32)], axis=1)   # (2H, OP)
    bl_p = jnp.concatenate([params["b_lin"],
                            jnp.zeros((OP - O,), f32)])[None, :]        # (1, OP)
    return wi_bd, b_cat, wh_cat, wl_p, bl_p


@jax.jit
def bidirectional_lstm(x, packed):
    """x: (B, T, I) batch_first, like the PyTorch module.  Returns (B, T, O)."""
    wi_bd, b_cat, wh_cat, wl_p, bl_p = packed

    xs = jnp.transpose(x, (1, 0, 2)).astype(jnp.float32)  # (T, B, I) time-major
    # Stack the forward and time-reversed streams along K so the kernel needs
    # no per-step fwd/bwd select: row block t = [x[t] | x[T-1-t]].
    x_mix = jnp.concatenate([xs, xs[::-1]], axis=-1).reshape(T * B, 2 * I)

    vmem = pl.BlockSpec(memory_space=pltpu.MemorySpace.VMEM)
    out_flat = pl.pallas_call(
        bilstm_kernel,
        out_shape=jax.ShapeDtypeStruct((T * B, OP), jnp.float32),
        in_specs=[vmem] * 6,
        out_specs=vmem,
        scratch_shapes=[pltpu.VMEM((T * B, 2 * H), jnp.float32)],
    )(x_mix, wi_bd, b_cat, wh_cat, wl_p, bl_p)

    out = out_flat.reshape(T, B, OP)[:, :, :O]            # drop lane padding
    return jnp.transpose(out, (1, 0, 2))                  # (B, T, O)


def reference(x, params):
    """Pure-JAX reference of the PyTorch forward, for verification."""
    def run_dir(xs, w_ih, w_hh, b_ih, b_hh):              # xs: (T, B, I)
        def f(carry, x_t):
            h, c = carry
            z = x_t @ w_ih.T + h @ w_hh.T + b_ih + b_hh
            i_g = jax.nn.sigmoid(z[:, 0 * H:1 * H])
            f_g = jax.nn.sigmoid(z[:, 1 * H:2 * H])
            g_g = jnp.tanh(z[:, 2 * H:3 * H])
            o_g = jax.nn.sigmoid(z[:, 3 * H:4 * H])
            c_new = f_g * c + i_g * g_g
            h_new = o_g * jnp.tanh(c_new)
            return (h_new, c_new), h_new
        h0 = jnp.zeros((xs.shape[1], H), jnp.float32)
        _, hs = lax.scan(f, (h0, h0), xs)
        return hs                                         # (T, B, H)

    xs = jnp.transpose(x, (1, 0, 2))
    hf = run_dir(xs, params["w_ih_f"], params["w_hh_f"], params["b_ih_f"], params["b_hh_f"])
    hb = run_dir(xs[::-1], params["w_ih_b"], params["w_hh_b"],
                 params["b_ih_b"], params["b_hh_b"])[::-1]
    rec = jnp.concatenate([hf, hb], axis=-1)              # (T, B, 2H)
    out = rec @ params["w_lin"].T + params["b_lin"]
    return jnp.transpose(out, (1, 0, 2))                  # (B, T, O)


if __name__ == "__main__":
    key = jax.random.PRNGKey(0)
    k_x, k_p = jax.random.split(key)
    x = jax.random.normal(k_x, (B, T, I), jnp.float32)
    params = init_params(k_p)

    # Pack weights ONCE, outside the per-call jit path.
    packed = jax.tree_util.tree_map(jax.block_until_ready, pack_params(params))

    out = jax.block_until_ready(bidirectional_lstm(x, packed))
    ref = jax.block_until_ready(reference(x, params))

    assert out.shape == (B, T, O), out.shape
    assert jnp.allclose(out, ref, rtol=1e-4, atol=1e-4), float(jnp.max(jnp.abs(out - ref)))
    print("KERNEL_OK")
</pallas_src>

<mosaic_0001>
module attributes {stable_mosaic.version = 11 : i64} {
  func.func @bilstm_kernel(%arg0: memref<16x64xf32, #tpu.memory_space<vmem>>, %arg1: memref<64x256xf32, #tpu.memory_space<vmem>>, %arg2: memref<1x256xf32, #tpu.memory_space<vmem>>, %arg3: memref<64x256xf32, #tpu.memory_space<vmem>>, %arg4: memref<64x128xf32, #tpu.memory_space<vmem>>, %arg5: memref<1x128xf32, #tpu.memory_space<vmem>>, %arg6: memref<16x128xf32, #tpu.memory_space<vmem>>, %arg7: memref<16x64xf32, #tpu.memory_space<vmem>>) attributes {dimension_semantics = [], scalar_prefetch = 0 : i64, scratch_operands = 1 : i64, tpu.core_type = #tpu.core_type<tc>} {
    %c0 = arith.constant 0 : index
    %c0_0 = arith.constant 0 : index
    %0 = vector.load %arg0[%c0, %c0_0] : memref<16x64xf32, #tpu.memory_space<vmem>>, vector<16x64xf32>
    %c0_1 = arith.constant 0 : index
    %c0_2 = arith.constant 0 : index
    %1 = vector.load %arg1[%c0_1, %c0_2] : memref<64x256xf32, #tpu.memory_space<vmem>>, vector<64x256xf32>
    %cst = arith.constant dense<0.000000e+00> : vector<16x256xf32>
    %2 = tpu.matmul %0, %1, %cst {dimension_numbers = #tpu.dot_dimension_numbers<[1], [0], [0], [1], [0, 0, 1, 1], [], []>} : vector<16x64xf32>, vector<64x256xf32>, vector<16x256xf32> -> vector<16x256xf32>
    %c0_3 = arith.constant 0 : index
    %c0_4 = arith.constant 0 : index
    %3 = vector.load %arg2[%c0_3, %c0_4] : memref<1x256xf32, #tpu.memory_space<vmem>>, vector<1x256xf32>
    %4 = vector.broadcast %3 : vector<1x256xf32> to vector<16x256xf32>
    %5 = arith.addf %2, %4 : vector<16x256xf32>
    %c0_5 = arith.constant 0 : index
    %c0_6 = arith.constant 0 : index
    %6 = vector.load %arg3[%c0_5, %c0_6] : memref<64x256xf32, #tpu.memory_space<vmem>>, vector<64x256xf32>
    %cst_7 = arith.constant 0.000000e+00 : f32
    %7 = vector.broadcast %cst_7 : f32 to vector<2x64xf32>
    %8 = vector.extract_strided_slice %5 {offsets = [0, 0], sizes = [2, 256], strides = [1, 1]} : vector<16x256xf32> to vector<2x256xf32>
    %9 = vector.extract_strided_slice %8 {offsets = [0, 0], sizes = [2, 192], strides = [1, 1]} : vector<2x256xf32> to vector<2x192xf32>
    %10 = arith.negf %9 : vector<2x192xf32>
    %11 = math.exp %10 : vector<2x192xf32>
    %cst_8 = arith.constant 1.000000e+00 : f32
    %12 = vector.broadcast %cst_8 : f32 to vector<2x192xf32>
    %13 = arith.addf %12, %11 : vector<2x192xf32>
    %14 = arith.divf %12, %13 : vector<2x192xf32>
    %15 = vector.extract_strided_slice %8 {offsets = [0, 192], sizes = [2, 64], strides = [1, 1]} : vector<2x256xf32> to vector<2x64xf32>
    %16 = math.tanh %15 : vector<2x64xf32>
    %17 = vector.extract_strided_slice %14 {offsets = [0, 0], sizes = [2, 64], strides = [1, 1]} : vector<2x192xf32> to vector<2x64xf32>
    %18 = vector.extract_strided_slice %14 {offsets = [0, 64], sizes = [2, 64], strides = [1, 1]} : vector<2x192xf32> to vector<2x64xf32>
    %19 = vector.extract_strided_slice %14 {offsets = [0, 128], sizes = [2, 64], strides = [1, 1]} : vector<2x192xf32> to vector<2x64xf32>
    %20 = arith.mulf %18, %7 : vector<2x64xf32>
    %21 = arith.mulf %17, %16 : vector<2x64xf32>
    %22 = arith.addf %20, %21 : vector<2x64xf32>
    %23 = math.tanh %22 : vector<2x64xf32>
    %24 = arith.mulf %19, %23 : vector<2x64xf32>
    %25 = vector.extract_strided_slice %24 {offsets = [0, 0], sizes = [2, 32], strides = [1, 1]} : vector<2x64xf32> to vector<2x32xf32>
    %c0_9 = arith.constant 0 : index
    %c0_10 = arith.constant 0 : index
    %26 = vector.load %arg7[%c0_9, %c0_10] : memref<16x64xf32, #tpu.memory_space<vmem>>, vector<2x32xf32>
    tpu.vector_store %arg7[%c0_9, %c0_10], %25 {strides = array<i32>} : memref<16x64xf32, #tpu.memory_space<vmem>>, vector<2x32xf32>,
    %27 = vector.extract_strided_slice %24 {offsets = [0, 32], sizes = [2, 32], strides = [1, 1]} : vector<2x64xf32> to vector<2x32xf32>
    %c14 = arith.constant 14 : index
    %c32 = arith.constant 32 : index
    %28 = vector.load %arg7[%c14, %c32] : memref<16x64xf32, #tpu.memory_space<vmem>>, vector<2x32xf32>
    tpu.vector_store %arg7[%c14, %c32], %27 {strides = array<i32>} : memref<16x64xf32, #tpu.memory_space<vmem>>, vector<2x32xf32>,
    %cst_11 = arith.constant dense<0.000000e+00> : vector<2x256xf32>
    %29 = tpu.matmul %24, %6, %cst_11 {dimension_numbers = #tpu.dot_dimension_numbers<[1], [0], [0], [1], [0, 0, 1, 1], [], []>} : vector<2x64xf32>, vector<64x256xf32>, vector<2x256xf32> -> vector<2x256xf32>
    %30 = vector.extract_strided_slice %5 {offsets = [2, 0], sizes = [2, 256], strides = [1, 1]} : vector<16x256xf32> to vector<2x256xf32>
    %31 = arith.addf %30, %29 : vector<2x256xf32>
    %32 = vector.extract_strided_slice %31 {offsets = [0, 0], sizes = [2, 192], strides = [1, 1]} : vector<2x256xf32> to vector<2x192xf32>
    %33 = arith.negf %32 : vector<2x192xf32>
    %34 = math.exp %33 : vector<2x192xf32>
    %cst_12 = arith.constant 1.000000e+00 : f32
    %35 = vector.broadcast %cst_12 : f32 to vector<2x192xf32>
    %36 = arith.addf %35, %34 : vector<2x192xf32>
    %37 = arith.divf %35, %36 : vector<2x192xf32>
    %38 = vector.extract_strided_slice %31 {offsets = [0, 192], sizes = [2, 64], strides = [1, 1]} : vector<2x256xf32> to vector<2x64xf32>
    %39 = math.tanh %38 : vector<2x64xf32>
    %40 = vector.extract_strided_slice %37 {offsets = [0, 0], sizes = [2, 64], strides = [1, 1]} : vector<2x192xf32> to vector<2x64xf32>
    %41 = vector.extract_strided_slice %37 {offsets = [0, 64], sizes = [2, 64], strides = [1, 1]} : vector<2x192xf32> to vector<2x64xf32>
    %42 = vector.extract_strided_slice %37 {offsets = [0, 128], sizes = [2, 64], strides = [1, 1]} : vector<2x192xf32> to vector<2x64xf32>
    %43 = arith.mulf %41, %22 : vector<2x64xf32>
    %44 = arith.mulf %40, %39 : vector<2x64xf32>
    %45 = arith.addf %43, %44 : vector<2x64xf32>
    %46 = math.tanh %45 : vector<2x64xf32>
    %47 = arith.mulf %42, %46 : vector<2x64xf32>
    %48 = vector.extract_strided_slice %47 {offsets = [0, 0], sizes = [2, 32], strides = [1, 1]} : vector<2x64xf32> to vector<2x32xf32>
    %c2 = arith.constant 2 : index
    %c0_13 = arith.constant 0 : index
    %49 = vector.load %arg7[%c2, %c0_13] : memref<16x64xf32, #tpu.memory_space<vmem>>, vector<2x32xf32>
    tpu.vector_store %arg7[%c2, %c0_13], %48 {strides = array<i32>} : memref<16x64xf32, #tpu.memory_space<vmem>>, vector<2x32xf32>,
    %50 = vector.extract_strided_slice %47 {offsets = [0, 32], sizes = [2, 32], strides = [1, 1]} : vector<2x64xf32> to vector<2x32xf32>
    %c12 = arith.constant 12 : index
    %c32_14 = arith.constant 32 : index
    %51 = vector.load %arg7[%c12, %c32_14] : memref<16x64xf32, #tpu.memory_space<vmem>>, vector<2x32xf32>
    tpu.vector_store %arg7[%c12, %c32_14], %50 {strides = array<i32>} : memref<16x64xf32, #tpu.memory_space<vmem>>, vector<2x32xf32>,
    %cst_15 = arith.constant dense<0.000000e+00> : vector<2x256xf32>
    %52 = tpu.matmul %47, %6, %cst_15 {dimension_numbers = #tpu.dot_dimension_numbers<[1], [0], [0], [1], [0, 0, 1, 1], [], []>} : vector<2x64xf32>, vector<64x256xf32>, vector<2x256xf32> -> vector<2x256xf32>
    %53 = vector.extract_strided_slice %5 {offsets = [4, 0], sizes = [2, 256], strides = [1, 1]} : vector<16x256xf32> to vector<2x256xf32>
    %54 = arith.addf %53, %52 : vector<2x256xf32>
    %55 = vector.extract_strided_slice %54 {offsets = [0, 0], sizes = [2, 192], strides = [1, 1]} : vector<2x256xf32> to vector<2x192xf32>
    %56 = arith.negf %55 : vector<2x192xf32>
    %57 = math.exp %56 : vector<2x192xf32>
    %cst_16 = arith.constant 1.000000e+00 : f32
    %58 = vector.broadcast %cst_16 : f32 to vector<2x192xf32>
    %59 = arith.addf %58, %57 : vector<2x192xf32>
    %60 = arith.divf %58, %59 : vector<2x192xf32>
    %61 = vector.extract_strided_slice %54 {offsets = [0, 192], sizes = [2, 64], strides = [1, 1]} : vector<2x256xf32> to vector<2x64xf32>
    %62 = math.tanh %61 : vector<2x64xf32>
    %63 = vector.extract_strided_slice %60 {offsets = [0, 0], sizes = [2, 64], strides = [1, 1]} : vector<2x192xf32> to vector<2x64xf32>
    %64 = vector.extract_strided_slice %60 {offsets = [0, 64], sizes = [2, 64], strides = [1, 1]} : vector<2x192xf32> to vector<2x64xf32>
    %65 = vector.extract_strided_slice %60 {offsets = [0, 128], sizes = [2, 64], strides = [1, 1]} : vector<2x192xf32> to vector<2x64xf32>
    %66 = arith.mulf %64, %45 : vector<2x64xf32>
    %67 = arith.mulf %63, %62 : vector<2x64xf32>
    %68 = arith.addf %66, %67 : vector<2x64xf32>
    %69 = math.tanh %68 : vector<2x64xf32>
    %70 = arith.mulf %65, %69 : vector<2x64xf32>
    %71 = vector.extract_strided_slice %70 {offsets = [0, 0], sizes = [2, 32], strides = [1, 1]} : vector<2x64xf32> to vector<2x32xf32>
    %c4 = arith.constant 4 : index
    %c0_17 = arith.constant 0 : index
    %72 = vector.load %arg7[%c4, %c0_17] : memref<16x64xf32, #tpu.memory_space<vmem>>, vector<2x32xf32>
    tpu.vector_store %arg7[%c4, %c0_17], %71 {strides = array<i32>} : memref<16x64xf32, #tpu.memory_space<vmem>>, vector<2x32xf32>,
    %73 = vector.extract_strided_slice %70 {offsets = [0, 32], sizes = [2, 32], strides = [1, 1]} : vector<2x64xf32> to vector<2x32xf32>
    %c10 = arith.constant 10 : index
    %c32_18 = arith.constant 32 : index
    %74 = vector.load %arg7[%c10, %c32_18] : memref<16x64xf32, #tpu.memory_space<vmem>>, vector<2x32xf32>
    tpu.vector_store %arg7[%c10, %c32_18], %73 {strides = array<i32>} : memref<16x64xf32, #tpu.memory_space<vmem>>, vector<2x32xf32>,
    %cst_19 = arith.constant dense<0.000000e+00> : vector<2x256xf32>
    %75 = tpu.matmul %70, %6, %cst_19 {dimension_numbers = #tpu.dot_dimension_numbers<[1], [0], [0], [1], [0, 0, 1, 1], [], []>} : vector<2x64xf32>, vector<64x256xf32>, vector<2x256xf32> -> vector<2x256xf32>
    %76 = vector.extract_strided_slice %5 {offsets = [6, 0], sizes = [2, 256], strides = [1, 1]} : vector<16x256xf32> to vector<2x256xf32>
    %77 = arith.addf %76, %75 : vector<2x256xf32>
    %78 = vector.extract_strided_slice %77 {offsets = [0, 0], sizes = [2, 192], strides = [1, 1]} : vector<2x256xf32> to vector<2x192xf32>
    %79 = arith.negf %78 : vector<2x192xf32>
    %80 = math.exp %79 : vector<2x192xf32>
    %cst_20 = arith.constant 1.000000e+00 : f32
    %81 = vector.broadcast %cst_20 : f32 to vector<2x192xf32>
    %82 = arith.addf %81, %80 : vector<2x192xf32>
    %83 = arith.divf %81, %82 : vector<2x192xf32>
    %84 = vector.extract_strided_slice %77 {offsets = [0, 192], sizes = [2, 64], strides = [1, 1]} : vector<2x256xf32> to vector<2x64xf32>
    %85 = math.tanh %84 : vector<2x64xf32>
    %86 = vector.extract_strided_slice %83 {offsets = [0, 0], sizes = [2, 64], strides = [1, 1]} : vector<2x192xf32> to vector<2x64xf32>
    %87 = vector.extract_strided_slice %83 {offsets = [0, 64], sizes = [2, 64], strides = [1, 1]} : vector<2x192xf32> to vector<2x64xf32>
    %88 = vector.extract_strided_slice %83 {offsets = [0, 128], sizes = [2, 64], strides = [1, 1]} : vector<2x192xf32> to vector<2x64xf32>
    %89 = arith.mulf %87, %68 : vector<2x64xf32>
    %90 = arith.mulf %86, %85 : vector<2x64xf32>
    %91 = arith.addf %89, %90 : vector<2x64xf32>
    %92 = math.tanh %91 : vector<2x64xf32>
    %93 = arith.mulf %88, %92 : vector<2x64xf32>
    %94 = vector.extract_strided_slice %93 {offsets = [0, 0], sizes = [2, 32], strides = [1, 1]} : vector<2x64xf32> to vector<2x32xf32>
    %c6 = arith.constant 6 : index
    %c0_21 = arith.constant 0 : index
    %95 = vector.load %arg7[%c6, %c0_21] : memref<16x64xf32, #tpu.memory_space<vmem>>, vector<2x32xf32>
    tpu.vector_store %arg7[%c6, %c0_21], %94 {strides = array<i32>} : memref<16x64xf32, #tpu.memory_space<vmem>>, vector<2x32xf32>,
    %96 = vector.extract_strided_slice %93 {offsets = [0, 32], sizes = [2, 32], strides = [1, 1]} : vector<2x64xf32> to vector<2x32xf32>
    %c8 = arith.constant 8 : index
    %c32_22 = arith.constant 32 : index
    %97 = vector.load %arg7[%c8, %c32_22] : memref<16x64xf32, #tpu.memory_space<vmem>>, vector<2x32xf32>
    tpu.vector_store %arg7[%c8, %c32_22], %96 {strides = array<i32>} : memref<16x64xf32, #tpu.memory_space<vmem>>, vector<2x32xf32>,
    %cst_23 = arith.constant dense<0.000000e+00> : vector<2x256xf32>
    %98 = tpu.matmul %93, %6, %cst_23 {dimension_numbers = #tpu.dot_dimension_numbers<[1], [0], [0], [1], [0, 0, 1, 1], [], []>} : vector<2x64xf32>, vector<64x256xf32>, vector<2x256xf32> -> vector<2x256xf32>
    %99 = vector.extract_strided_slice %5 {offsets = [8, 0], sizes = [2, 256], strides = [1, 1]} : vector<16x256xf32> to vector<2x256xf32>
    %100 = arith.addf %99, %98 : vector<2x256xf32>
    %101 = vector.extract_strided_slice %100 {offsets = [0, 0], sizes = [2, 192], strides = [1, 1]} : vector<2x256xf32> to vector<2x192xf32>
    %102 = arith.negf %101 : vector<2x192xf32>
    %103 = math.exp %102 : vector<2x192xf32>
    %cst_24 = arith.constant 1.000000e+00 : f32
    %104 = vector.broadcast %cst_24 : f32 to vector<2x192xf32>
    %105 = arith.addf %104, %103 : vector<2x192xf32>
    %106 = arith.divf %104, %105 : vector<2x192xf32>
    %107 = vector.extract_strided_slice %100 {offsets = [0, 192], sizes = [2, 64], strides = [1, 1]} : vector<2x256xf32> to vector<2x64xf32>
    %108 = math.tanh %107 : vector<2x64xf32>
    %109 = vector.extract_strided_slice %106 {offsets = [0, 0], sizes = [2, 64], strides = [1, 1]} : vector<2x192xf32> to vector<2x64xf32>
    %110 = vector.extract_strided_slice %106 {offsets = [0, 64], sizes = [2, 64], strides = [1, 1]} : vector<2x192xf32> to vector<2x64xf32>
    %111 = vector.extract_strided_slice %106 {offsets = [0, 128], sizes = [2, 64], strides = [1, 1]} : vector<2x192xf32> to vector<2x64xf32>
    %112 = arith.mulf %110, %91 : vector<2x64xf32>
    %113 = arith.mulf %109, %108 : vector<2x64xf32>
    %114 = arith.addf %112, %113 : vector<2x64xf32>
    %115 = math.tanh %114 : vector<2x64xf32>
    %116 = arith.mulf %111, %115 : vector<2x64xf32>
    %117 = vector.extract_strided_slice %116 {offsets = [0, 0], sizes = [2, 32], strides = [1, 1]} : vector<2x64xf32> to vector<2x32xf32>
    %c8_25 = arith.constant 8 : index
    %c0_26 = arith.constant 0 : index
    %118 = vector.load %arg7[%c8_25, %c0_26] : memref<16x64xf32, #tpu.memory_space<vmem>>, vector<2x32xf32>
    tpu.vector_store %arg7[%c8_25, %c0_26], %117 {strides = array<i32>} : memref<16x64xf32, #tpu.memory_space<vmem>>, vector<2x32xf32>,
    %119 = vector.extract_strided_slice %116 {offsets = [0, 32], sizes = [2, 32], strides = [1, 1]} : vector<2x64xf32> to vector<2x32xf32>
    %c6_27 = arith.constant 6 : index
    %c32_28 = arith.constant 32 : index
    %120 = vector.load %arg7[%c6_27, %c32_28] : memref<16x64xf32, #tpu.memory_space<vmem>>, vector<2x32xf32>
    tpu.vector_store %arg7[%c6_27, %c32_28], %119 {strides = array<i32>} : memref<16x64xf32, #tpu.memory_space<vmem>>, vector<2x32xf32>,
    %cst_29 = arith.constant dense<0.000000e+00> : vector<2x256xf32>
    %121 = tpu.matmul %116, %6, %cst_29 {dimension_numbers = #tpu.dot_dimension_numbers<[1], [0], [0], [1], [0, 0, 1, 1], [], []>} : vector<2x64xf32>, vector<64x256xf32>, vector<2x256xf32> -> vector<2x256xf32>
    %122 = vector.extract_strided_slice %5 {offsets = [10, 0], sizes = [2, 256], strides = [1, 1]} : vector<16x256xf32> to vector<2x256xf32>
    %123 = arith.addf %122, %121 : vector<2x256xf32>
    %124 = vector.extract_strided_slice %123 {offsets = [0, 0], sizes = [2, 192], strides = [1, 1]} : vector<2x256xf32> to vector<2x192xf32>
    %125 = arith.negf %124 : vector<2x192xf32>
    %126 = math.exp %125 : vector<2x192xf32>
    %cst_30 = arith.constant 1.000000e+00 : f32
    %127 = vector.broadcast %cst_30 : f32 to vector<2x192xf32>
    %128 = arith.addf %127, %126 : vector<2x192xf32>
    %129 = arith.divf %127, %128 : vector<2x192xf32>
    %130 = vector.extract_strided_slice %123 {offsets = [0, 192], sizes = [2, 64], strides = [1, 1]} : vector<2x256xf32> to vector<2x64xf32>
    %131 = math.tanh %130 : vector<2x64xf32>
    %132 = vector.extract_strided_slice %129 {offsets = [0, 0], sizes = [2, 64], strides = [1, 1]} : vector<2x192xf32> to vector<2x64xf32>
    %133 = vector.extract_strided_slice %129 {offsets = [0, 64], sizes = [2, 64], strides = [1, 1]} : vector<2x192xf32> to vector<2x64xf32>
    %134 = vector.extract_strided_slice %129 {offsets = [0, 128], sizes = [2, 64], strides = [1, 1]} : vector<2x192xf32> to vector<2x64xf32>
    %135 = arith.mulf %133, %114 : vector<2x64xf32>
    %136 = arith.mulf %132, %131 : vector<2x64xf32>
    %137 = arith.addf %135, %136 : vector<2x64xf32>
    %138 = math.tanh %137 : vector<2x64xf32>
    %139 = arith.mulf %134, %138 : vector<2x64xf32>
    %140 = vector.extract_strided_slice %139 {offsets = [0, 0], sizes = [2, 32], strides = [1, 1]} : vector<2x64xf32> to vector<2x32xf32>
    %c10_31 = arith.constant 10 : index
    %c0_32 = arith.constant 0 : index
    %141 = vector.load %arg7[%c10_31, %c0_32] : memref<16x64xf32, #tpu.memory_space<vmem>>, vector<2x32xf32>
    tpu.vector_store %arg7[%c10_31, %c0_32], %140 {strides = array<i32>} : memref<16x64xf32, #tpu.memory_space<vmem>>, vector<2x32xf32>,
    %142 = vector.extract_strided_slice %139 {offsets = [0, 32], sizes = [2, 32], strides = [1, 1]} : vector<2x64xf32> to vector<2x32xf32>
    %c4_33 = arith.constant 4 : index
    %c32_34 = arith.constant 32 : index
    %143 = vector.load %arg7[%c4_33, %c32_34] : memref<16x64xf32, #tpu.memory_space<vmem>>, vector<2x32xf32>
    tpu.vector_store %arg7[%c4_33, %c32_34], %142 {strides = array<i32>} : memref<16x64xf32, #tpu.memory_space<vmem>>, vector<2x32xf32>,
    %cst_35 = arith.constant dense<0.000000e+00> : vector<2x256xf32>
    %144 = tpu.matmul %139, %6, %cst_35 {dimension_numbers = #tpu.dot_dimension_numbers<[1], [0], [0], [1], [0, 0, 1, 1], [], []>} : vector<2x64xf32>, vector<64x256xf32>, vector<2x256xf32> -> vector<2x256xf32>
    %145 = vector.extract_strided_slice %5 {offsets = [12, 0], sizes = [2, 256], strides = [1, 1]} : vector<16x256xf32> to vector<2x256xf32>
    %146 = arith.addf %145, %144 : vector<2x256xf32>
    %147 = vector.extract_strided_slice %146 {offsets = [0, 0], sizes = [2, 192], strides = [1, 1]} : vector<2x256xf32> to vector<2x192xf32>
    %148 = arith.negf %147 : vector<2x192xf32>
    %149 = math.exp %148 : vector<2x192xf32>
    %cst_36 = arith.constant 1.000000e+00 : f32
    %150 = vector.broadcast %cst_36 : f32 to vector<2x192xf32>
    %151 = arith.addf %150, %149 : vector<2x192xf32>
    %152 = arith.divf %150, %151 : vector<2x192xf32>
    %153 = vector.extract_strided_slice %146 {offsets = [0, 192], sizes = [2, 64], strides = [1, 1]} : vector<2x256xf32> to vector<2x64xf32>
    %154 = math.tanh %153 : vector<2x64xf32>
    %155 = vector.extract_strided_slice %152 {offsets = [0, 0], sizes = [2, 64], strides = [1, 1]} : vector<2x192xf32> to vector<2x64xf32>
    %156 = vector.extract_strided_slice %152 {offsets = [0, 64], sizes = [2, 64], strides = [1, 1]} : vector<2x192xf32> to vector<2x64xf32>
    %157 = vector.extract_strided_slice %152 {offsets = [0, 128], sizes = [2, 64], strides = [1, 1]} : vector<2x192xf32> to vector<2x64xf32>
    %158 = arith.mulf %156, %137 : vector<2x64xf32>
    %159 = arith.mulf %155, %154 : vector<2x64xf32>
    %160 = arith.addf %158, %159 : vector<2x64xf32>
    %161 = math.tanh %160 : vector<2x64xf32>
    %162 = arith.mulf %157, %161 : vector<2x64xf32>
    %163 = vector.extract_strided_slice %162 {offsets = [0, 0], sizes = [2, 32], strides = [1, 1]} : vector<2x64xf32> to vector<2x32xf32>
    %c12_37 = arith.constant 12 : index
    %c0_38 = arith.constant 0 : index
    %164 = vector.load %arg7[%c12_37, %c0_38] : memref<16x64xf32, #tpu.memory_space<vmem>>, vector<2x32xf32>
    tpu.vector_store %arg7[%c12_37, %c0_38], %163 {strides = array<i32>} : memref<16x64xf32, #tpu.memory_space<vmem>>, vector<2x32xf32>,
    %165 = vector.extract_strided_slice %162 {offsets = [0, 32], sizes = [2, 32], strides = [1, 1]} : vector<2x64xf32> to vector<2x32xf32>
    %c2_39 = arith.constant 2 : index
    %c32_40 = arith.constant 32 : index
    %166 = vector.load %arg7[%c2_39, %c32_40] : memref<16x64xf32, #tpu.memory_space<vmem>>, vector<2x32xf32>
    tpu.vector_store %arg7[%c2_39, %c32_40], %165 {strides = array<i32>} : memref<16x64xf32, #tpu.memory_space<vmem>>, vector<2x32xf32>,
    %cst_41 = arith.constant dense<0.000000e+00> : vector<2x256xf32>
    %167 = tpu.matmul %162, %6, %cst_41 {dimension_numbers = #tpu.dot_dimension_numbers<[1], [0], [0], [1], [0, 0, 1, 1], [], []>} : vector<2x64xf32>, vector<64x256xf32>, vector<2x256xf32> -> vector<2x256xf32>
    %168 = vector.extract_strided_slice %5 {offsets = [14, 0], sizes = [2, 256], strides = [1, 1]} : vector<16x256xf32> to vector<2x256xf32>
    %169 = arith.addf %168, %167 : vector<2x256xf32>
    %170 = vector.extract_strided_slice %169 {offsets = [0, 0], sizes = [2, 192], strides = [1, 1]} : vector<2x256xf32> to vector<2x192xf32>
    %171 = arith.negf %170 : vector<2x192xf32>
    %172 = math.exp %171 : vector<2x192xf32>
    %cst_42 = arith.constant 1.000000e+00 : f32
    %173 = vector.broadcast %cst_42 : f32 to vector<2x192xf32>
    %174 = arith.addf %173, %172 : vector<2x192xf32>
    %175 = arith.divf %173, %174 : vector<2x192xf32>
    %176 = vector.extract_strided_slice %169 {offsets = [0, 192], sizes = [2, 64], strides = [1, 1]} : vector<2x256xf32> to vector<2x64xf32>
    %177 = math.tanh %176 : vector<2x64xf32>
    %178 = vector.extract_strided_slice %175 {offsets = [0, 0], sizes = [2, 64], strides = [1, 1]} : vector<2x192xf32> to vector<2x64xf32>
    %179 = vector.extract_strided_slice %175 {offsets = [0, 64], sizes = [2, 64], strides = [1, 1]} : vector<2x192xf32> to vector<2x64xf32>
    %180 = vector.extract_strided_slice %175 {offsets = [0, 128], sizes = [2, 64], strides = [1, 1]} : vector<2x192xf32> to vector<2x64xf32>
    %181 = arith.mulf %179, %160 : vector<2x64xf32>
    %182 = arith.mulf %178, %177 : vector<2x64xf32>
    %183 = arith.addf %181, %182 : vector<2x64xf32>
    %184 = math.tanh %183 : vector<2x64xf32>
    %185 = arith.mulf %180, %184 : vector<2x64xf32>
    %186 = vector.extract_strided_slice %185 {offsets = [0, 0], sizes = [2, 32], strides = [1, 1]} : vector<2x64xf32> to vector<2x32xf32>
    %c14_43 = arith.constant 14 : index
    %c0_44 = arith.constant 0 : index
    %187 = vector.load %arg7[%c14_43, %c0_44] : memref<16x64xf32, #tpu.memory_space<vmem>>, vector<2x32xf32>
    tpu.vector_store %arg7[%c14_43, %c0_44], %186 {strides = array<i32>} : memref<16x64xf32, #tpu.memory_space<vmem>>, vector<2x32xf32>,
    %188 = vector.extract_strided_slice %185 {offsets = [0, 32], sizes = [2, 32], strides = [1, 1]} : vector<2x64xf32> to vector<2x32xf32>
    %c0_45 = arith.constant 0 : index
    %c32_46 = arith.constant 32 : index
    %189 = vector.load %arg7[%c0_45, %c32_46] : memref<16x64xf32, #tpu.memory_space<vmem>>, vector<2x32xf32>
    tpu.vector_store %arg7[%c0_45, %c32_46], %188 {strides = array<i32>} : memref<16x64xf32, #tpu.memory_space<vmem>>, vector<2x32xf32>,
    %c0_47 = arith.constant 0 : index
    %c0_48 = arith.constant 0 : index
    %190 = vector.load %arg7[%c0_47, %c0_48] : memref<16x64xf32, #tpu.memory_space<vmem>>, vector<16x64xf32>
    %c0_49 = arith.constant 0 : index
    %c0_50 = arith.constant 0 : index
    %191 = vector.load %arg4[%c0_49, %c0_50] : memref<64x128xf32, #tpu.memory_space<vmem>>, vector<64x128xf32>
    %cst_51 = arith.constant dense<0.000000e+00> : vector<16x128xf32>
    %192 = tpu.matmul %190, %191, %cst_51 {dimension_numbers = #tpu.dot_dimension_numbers<[1], [0], [0], [1], [0, 0, 1, 1], [], []>} : vector<16x64xf32>, vector<64x128xf32>, vector<16x128xf32> -> vector<16x128xf32>
    %c0_52 = arith.constant 0 : index
    %c0_53 = arith.constant 0 : index
    %193 = vector.load %arg5[%c0_52, %c0_53] : memref<1x128xf32, #tpu.memory_space<vmem>>, vector<1x128xf32>
    %194 = vector.broadcast %193 : vector<1x128xf32> to vector<16x128xf32>
    %195 = arith.addf %192, %194 : vector<16x128xf32>
    %c0_54 = arith.constant 0 : index
    %c0_55 = arith.constant 0 : index
    %196 = vector.load %arg6[%c0_54, %c0_55] : memref<16x128xf32, #tpu.memory_space<vmem>>, vector<16x128xf32>
    tpu.vector_store %arg6[%c0_54, %c0_55], %195 {strides = array<i32>} : memref<16x128xf32, #tpu.memory_space<vmem>>, vector<16x128xf32>,
    return
  }
}

</mosaic_0001>

<bundles_post_ra>
// kernel: bidirectional_lstm.1
= control target key start
LH: loop header
LB: loop body
LE: loop exit
PB: predicated region body
PF: predicated region fallthrough
CT: control target
= control target key end

     0   :  { %11 = vsyncpa [#allocation4], 0  ;;  %s1590_s0 = inlined_call_operand.vmem [shape: f32[16,64], index: 0, kind: input, shape index: {}]   ;;  %s1591_s1 = inlined_call_operand.hbm [shape: f32[64,256], index: 1, kind: input, shape index: {}]   ;;  %s1592_s2 = inlined_call_operand.vmem [shape: f32[1,256], index: 2, kind: input, shape index: {}]   ;;  %s1593_s3 = inlined_call_operand.hbm [shape: f32[64,256], index: 3, kind: input, shape index: {}]   ;;  %s1594_s4 = inlined_call_operand.vmem [shape: f32[64,128], index: 4, kind: input, shape index: {}]   ;;  %s1595_s5 = inlined_call_operand.vmem [shape: f32[1,128], index: 5, kind: input, shape index: {}]   ;;  %s1596_s6 = inlined_call_operand.vmem [shape: f32[16,128], index: 6, kind: output, shape index: {}]  }
   0x1   :  { %s19_s23 = sshll.u32 %s1591_s1, 4  ;;  %s20_s23 = int_to_ptr.hbm [resolvable:$true] %s19_s23 }
   0x2   :  { %12 = vsyncpa [#allocation6], 0  ;;  %s1238_s24 = smov [#allocation3]   ;;  %s34_s28 = sshll.u32 %s1593_s3, 4  ;;  %s35_s28 = int_to_ptr.hbm [resolvable:$true] %s34_s28 }
   0x3   :  { %s21_s25 = sshll.u32 %s1238_s24, 4  ;;  %s1239_s29 = smov 256   ;;  %s22_s25 = int_to_ptr.vmem [resolvable:$true] %s21_s25 }
   0x4   :  { %s1240_s30 = smov 16   ;;  %s1241_s7 = smov [#allocation5]  }
   0x5   :  { %27 = dma.hbm_to_vmem [thread:$0]  %s20_s23, 2048, %s22_s25, [#allocation4], %s1239_s29, %s1239_s29, %s1240_s30  }
   0x6   :  { %s36_s8 = sshll.u32 %s1241_s7, 4  ;;  %s37_s8 = int_to_ptr.vmem [resolvable:$true] %s36_s8 }
   0x7   :  { %42 = dma.hbm_to_vmem [thread:$0]  %s35_s28, 2048, %s37_s8, [#allocation6], %s1239_s29, %s1239_s29, %s1240_s30  }
   0x8   :  { %1234 = dma.done.wait [#allocation4], 2048  }
   0x9   :  { %1235 = vsyncadd [#allocation4], 4294965248 }
   0xa   :  { %1236 = dma.done.wait [#allocation6], 2048  }
   0xb   :  { %1237 = vsyncadd [#allocation6], 4294965248  ;;  %v71_v0 = vld [vmem:[#allocation3 + $0x70] sm:$0xff]  ;;  %v69_v1 = vld [vmem:[#allocation3 + $0x60] sm:$0xff]  ;;  %vm79_vm0 = vcmask 523264   ;;  %vm204_vm9 = vcmask 254976  }
   0xc   :  { %94 = vmatpush.msra.mxu1 %v71_v0  ;;  %v67_v2 = vld [vmem:[#allocation3 + $0x50] sm:$0xff]  ;;  %v65_v3 = vld [vmem:[#allocation3 + $0x40] sm:$0xff]  ;;  %v72_v9 = vld [vmem:[#allocation3 + $0x78] sm:$0xff]  ;;  %vm206_vm10 = vcmask 517376  }
   0xd   :  { %v63_v4 = vld [vmem:[#allocation3 + $0x30] sm:$0xff]  ;;  %v61_v5 = vld [vmem:[#allocation3 + $0x20] sm:$0xff]  ;;  %v70_v10 = vld [vmem:[#allocation3 + $0x68] sm:$0xff] }
   0xe   :  { %95 = vmatpush.msra.mxu1 %v69_v1  ;;  %v59_v6 = vld [vmem:[#allocation3 + $0x10] sm:$0xff]  ;;  %v57_v7 = vld [vmem:[#allocation3] sm:$0xff]  ;;  %v68_v11 = vld [vmem:[#allocation3 + $0x58] sm:$0xff] }
   0xf   :  { %v55_v8 = vld [vmem:[%s1590_s0] sm:$0xff]  ;;  %v66_v12 = vld [vmem:[#allocation3 + $0x48] sm:$0xff]  ;;  %v56_v13 = vld [vmem:[%s1590_s0 + $0x8] sm:$0xff]  ;;  %s1242_s0 = smov 64  }
  0x10   :  { %96 = vmatpush.msra.mxu1 %v67_v2  ;;  %v64_v14 = vld [vmem:[#allocation3 + $0x38] sm:$0xff]  ;;  %v62_v15 = vld [vmem:[#allocation3 + $0x28] sm:$0xff]  ;;  %v1297_v19 = vld [vmem:[%s1592_s2] sm:$0x3] }
  0x11   :  { %v60_v16 = vld [vmem:[#allocation3 + $0x18] sm:$0xff]  ;;  %v58_v17 = vld [vmem:[#allocation3 + $0x8] sm:$0xff]  ;;  %v75_v20 = vperm.slane %v1297_v19, 0  ;;  %v76_v23 = vperm.slane %v1297_v19, 1  ;;  %v1313_v43 = vld [vmem:[#allocation5 + $0x70] sm:$0xff] }
  0x12   :  { %97 = vmatpush.msra.mxu1 %v65_v3  ;;  %v1315_v44 = vld [vmem:[#allocation5 + $0x78] sm:$0xff]  ;;  %v1317_v45 = vld [vmem:[#allocation5 + $0x60] sm:$0xff]  ;;  %219 = vmatpush.msra.mxu2 %v1313_v43  ;;  %v1321_v46 = vld [vmem:[#allocation5 + $0x68] sm:$0xff] }
  0x13   :  { %239 = vmatpush.msra.mxu3 %v1315_v44  ;;  %v1323_v47 = vld [vmem:[#allocation5 + $0x50] sm:$0xff]  ;;  %v1325_v48 = vld [vmem:[#allocation5 + $0x58] sm:$0xff]  ;;  %334 = vmatpush.msra.mxu0 %v1313_v43  ;;  %v1331_v49 = vld [vmem:[#allocation5 + $0x40] sm:$0xff] }
  0x14   :  { %98 = vmatpush.msra.mxu1 %v63_v4  ;;  %220 = vmatpush.msra.mxu2 %v1317_v45  ;;  %v1333_v50 = vld [vmem:[#allocation5 + $0x48] sm:$0xff]  ;;  %v1339_v51 = vld [vmem:[#allocation5 + $0x30] sm:$0xff]  ;;  %v1341_v52 = vld [vmem:[#allocation5 + $0x38] sm:$0xff] }
  0x15   :  { %240 = vmatpush.msra.mxu3 %v1321_v46  ;;  %335 = vmatpush.msra.mxu0 %v1317_v45  ;;  %v1347_v53 = vld [vmem:[#allocation5 + $0x20] sm:$0xff]  ;;  %v1349_v54 = vld [vmem:[#allocation5 + $0x28] sm:$0xff]  ;;  %v1355_v55 = vld [vmem:[#allocation5 + $0x10] sm:$0xff] }
  0x16   :  { %99 = vmatpush.msra.mxu1 %v61_v5  ;;  %221 = vmatpush.msra.mxu2 %v1323_v47  ;;  %v1357_v56 = vld [vmem:[#allocation5 + $0x18] sm:$0xff]  ;;  %v1374_v0 = vld [vmem:[#allocation5] sm:$0xff]  ;;  %v1376_v1 = vld [vmem:[#allocation5 + $0x8] sm:$0xff] }
  0x17   :  { %241 = vmatpush.msra.mxu3 %v1325_v48  ;;  %336 = vmatpush.msra.mxu0 %v1323_v47 }
  0x18   :  { %100 = vmatpush.msra.mxu1 %v59_v6  ;;  %222 = vmatpush.msra.mxu2 %v1331_v49 }
  0x19   :  { %242 = vmatpush.msra.mxu3 %v1333_v50  ;;  %337 = vmatpush.msra.mxu0 %v1331_v49 }
  0x1a   :  { %101 = vmatpush.msra.mxu1 %v57_v7  ;;  %223 = vmatpush.msra.mxu2 %v1339_v51 }
  0x1b   :  { %1048 = vmatmul.msk.f32.vlgmr.msra.gmra.mxu1 %vm79_vm0, %v55_v8  ;;  %243 = vmatpush.msra.mxu3 %v1341_v52 }
  0x1c   :  { %117 = vmatpush.msrb.mxu1 %v72_v9  ;;  %338 = vmatpush.msra.mxu0 %v1339_v51 }
  0x1d   :  { %224 = vmatpush.msra.mxu2 %v1347_v53  ;;  %244 = vmatpush.msra.mxu3 %v1349_v54 }
  0x1e   :  { %118 = vmatpush.msrb.mxu1 %v70_v10  ;;  %339 = vmatpush.msra.mxu0 %v1347_v53 }
  0x1f   :  { %225 = vmatpush.msra.mxu2 %v1355_v55  ;;  %245 = vmatpush.msra.mxu3 %v1357_v56 }
  0x20   :  { %119 = vmatpush.msrb.mxu1 %v68_v11  ;;  %340 = vmatpush.msra.mxu0 %v1355_v55 }
  0x21   :  { %226 = vmatpush.msra.mxu2 %v1374_v0  ;;  %246 = vmatpush.msra.mxu3 %v1376_v1 }
  0x22   :  { %120 = vmatpush.msrb.mxu1 %v66_v12  ;;  %341 = vmatpush.msra.mxu0 %v1374_v0 }
  0x23   :  { %1049 = vmatmul.msk.f32.gmra.mxu1 %vm79_vm0, %v56_v13  ;;  %449 = vmatpush.msrb.mxu2 %v1313_v43 }
  0x24   :  { %121 = vmatpush.msrb.mxu1 %v64_v14  ;;  %469 = vmatpush.msrb.mxu3 %v1315_v44 }
  0x25   :  { %564 = vmatpush.msrb.mxu0 %v1313_v43  ;;  %450 = vmatpush.msrb.mxu2 %v1317_v45 }
  0x26   :  { %122 = vmatpush.msrb.mxu1 %v62_v15  ;;  %470 = vmatpush.msrb.mxu3 %v1321_v46 }
  0x27   :  { %565 = vmatpush.msrb.mxu0 %v1317_v45  ;;  %451 = vmatpush.msrb.mxu2 %v1323_v47 }
  0x28   :  { %123 = vmatpush.msrb.mxu1 %v60_v16  ;;  %471 = vmatpush.msrb.mxu3 %v1325_v48 }
  0x29   :  { %566 = vmatpush.msrb.mxu0 %v1323_v47  ;;  %452 = vmatpush.msrb.mxu2 %v1331_v49 }
  0x2a   :  { %124 = vmatpush.msrb.mxu1 %v58_v17  ;;  %472 = vmatpush.msrb.mxu3 %v1333_v50 }
  0x2b   :  { %1050 = vmatmul.msk.f32.vlgmr.msrb.gmra.mxu1 %vm79_vm0, %v55_v8  ;;  %567 = vmatpush.msrb.mxu0 %v1331_v49 }
  0x2c   :  { %354 = vmatpush.msra.mxu1 %v1315_v44  ;;  %453 = vmatpush.msrb.mxu2 %v1339_v51 }
  0x2d   :  { %473 = vmatpush.msrb.mxu3 %v1341_v52  ;;  %568 = vmatpush.msrb.mxu0 %v1339_v51 }
  0x2e   :  { %355 = vmatpush.msra.mxu1 %v1321_v46  ;;  %454 = vmatpush.msrb.mxu2 %v1347_v53 }
  0x2f   :  { %474 = vmatpush.msrb.mxu3 %v1349_v54  ;;  %569 = vmatpush.msrb.mxu0 %v1347_v53 }
  0x30   :  { %356 = vmatpush.msra.mxu1 %v1325_v48  ;;  %455 = vmatpush.msrb.mxu2 %v1355_v55 }
  0x31   :  { %475 = vmatpush.msrb.mxu3 %v1357_v56  ;;  %570 = vmatpush.msrb.mxu0 %v1355_v55 }
  0x32   :  { %357 = vmatpush.msra.mxu1 %v1333_v50  ;;  %456 = vmatpush.msrb.mxu2 %v1374_v0 }
  0x33   :  { %1051 = vmatmul.msk.f32.gmra.mxu1 %vm79_vm0, %v56_v13  ;;  %476 = vmatpush.msrb.mxu3 %v1376_v1 }
  0x34   :  { %358 = vmatpush.msra.mxu1 %v1341_v52  ;;  %571 = vmatpush.msrb.mxu0 %v1374_v0 }
  0x36   :  { %359 = vmatpush.msra.mxu1 %v1349_v54 }
  0x38   :  { %360 = vmatpush.msra.mxu1 %v1357_v56 }
  0x3a   :  { %361 = vmatpush.msra.mxu1 %v1376_v1 }
  0x3c   :  { %584 = vmatpush.msrb.mxu1 %v1315_v44 }
  0x3e   :  { %585 = vmatpush.msrb.mxu1 %v1321_v46 }
  0x40   :  { %586 = vmatpush.msrb.mxu1 %v1325_v48 }
  0x42   :  { %587 = vmatpush.msrb.mxu1 %v1333_v50 }
  0x44   :  { %588 = vmatpush.msrb.mxu1 %v1341_v52 }
  0x46   :  { %589 = vmatpush.msrb.mxu1 %v1349_v54 }
  0x48   :  { %590 = vmatpush.msrb.mxu1 %v1357_v56 }
  0x4a   :  { %591 = vmatpush.msrb.mxu1 %v1376_v1 }
  0x98   :  { %v103_v18 = vpop.f32.mrf.mxu1 }
  0x99   :  { %v1309_v27 = vadd.f32 %v103_v18, %v75_v20 }
  0x9b   :  { %v1052_v28 = vmul.f32 -1.442695, %v1309_v27 }
  0xa0   :  { %v106_v21 = vpop.f32.mrf.mxu1 }
  0xa1   :  { %v1300_v22 = vadd.f32 %v106_v21, %v75_v20 }
  0xa8   :  { %v126_v24 = vpop.f32.mrf.mxu1 }
  0xa9   :  { %v1305_v25 = vadd.f32 %v126_v24, %v76_v23 }
  0xab   :  { %1090 = vtanh.f32 %v1305_v25  ;;  %v1053_v61 = vmul.f32 -1.442695, %v1305_v25 }
  0xac   :  { %1092 = vpow2.f32 %v1052_v28 }
  0xb1   :  { %v1091_v26 = vpop.eup %1090 }
  0xb2   :  { %189 = vrot.lane.b32.xlu0 %v1091_v26, %s1242_s0  ;;  %v1093_v29 = vpop.eup %1092 }
  0xb3   :  { %v154_v30 = vadd.f32 1.0, %v1093_v29 }
  0xb5   :  { %1094 = vrcp.f32 %v154_v30  ;;  %v167_v36 = vand.u32 2147483648, %v154_v30  ;;  %vm161_vm2 = vweird.f32 %v154_v30  ;;  %v165_v37 = vand.u32 2147483647, %v154_v30 }
  0xb7   :  { %v168_v39 = vor.u32 1.1754944e-38, %v167_v36  ;;  %vm166_vm4 = vcmp.eq.f32.partialorder %v165_v37, 8.507059e+37 }
  0xbb   :  { %v1095_v31 = vpop.eup %1094 }
  0xbc   :  { %v157_v32 = vmul.f32 %v1095_v31, %v154_v30  ;;  %vm162_vm1 = vweird.f32 %v1095_v31 }
  0xbd   :  { %vm163_vm3 = vmor %vm161_vm2, %vm162_vm1 }
  0xbe   :  { %v158_v33 = vsub.f32 1.0, %v157_v32 }
  0xc0   :  { %v159_v34 = vmul.f32 %v1095_v31, %v158_v33 }
  0xc2   :  { %v160_v35 = vadd.f32 %v1095_v31, %v159_v34 }
  0xc4   :  { %v164_v38 = vsel %vm163_vm3, %v1095_v31, %v160_v35 }
  0xc5   :  { %v169_v41 = vsel %vm166_vm4, %v168_v39, %v164_v38  ;;  %vm318_vm4 = vcmask 257026  }
  0xc6   :  { %v187_v57 = vmul.f32 0.0, %v169_v41 }
 0x124   :  { %v190_v40 = vpop.permute.xlu0 %189 }
 0x125   :  { %v192_v42 = vmul.f32 %v190_v40, %v169_v41 }
 0x127   :  { %194 = vrot.lane.b32.xlu0 %v192_v42, %s1242_s0 }
 0x199   :  { %v195_v58 = vpop.permute.xlu0 %194 }
 0x19a   :  { %v1369_v59 = vadd.f32 %v195_v58, %v187_v57 }
 0x19c   :  { %1096 = vtanh.f32 %v1369_v59  ;;  %v299_v41 = vrot.slane %v1369_v59, 6 }
 0x19d   :  { %1098 = vpow2.f32 %v1053_v61 }
 0x1a2   :  { %v1097_v60 = vpop.eup %1096 }
 0x1a3   :  { %200 = vrot.lane.b32.xlu1 %v1097_v60, %s1242_s0  ;;  %v1099_v62 = vpop.eup %1098 }
 0x1a4   :  { %v155_v63 = vadd.f32 1.0, %v1099_v62 }
 0x1a6   :  { %1100 = vrcp.f32 %v155_v63  ;;  %v182_v7 = vand.u32 2147483648, %v155_v63  ;;  %vm176_vm6 = vweird.f32 %v155_v63  ;;  %v180_v8 = vand.u32 2147483647, %v155_v63 }
 0x1a8   :  { %v183_v10 = vor.u32 1.1754944e-38, %v182_v7  ;;  %vm181_vm8 = vcmp.eq.f32.partialorder %v180_v8, 8.507059e+37 }
 0x1ac   :  { %v1101_v2 = vpop.eup %1100 }
 0x1ad   :  { %v172_v3 = vmul.f32 %v1101_v2, %v155_v63  ;;  %vm177_vm5 = vweird.f32 %v1101_v2 }
 0x1ae   :  { %vm178_vm7 = vmor %vm176_vm6, %vm177_vm5  ;;  %vm320_vm5 = vcmask 519426  }
 0x1af   :  { %v173_v4 = vsub.f32 1.0, %v172_v3 }
 0x1b1   :  { %v174_v5 = vmul.f32 %v1101_v2, %v173_v4 }
 0x1b3   :  { %v175_v6 = vadd.f32 %v1101_v2, %v174_v5 }
 0x1b5   :  { %v179_v9 = vsel %vm178_vm7, %v1101_v2, %v175_v6 }
 0x1b6   :  { %v184_v11 = vsel %vm181_vm8, %v183_v10, %v179_v9 }
 0x215   :  { %v201_v12 = vpop.permute.xlu1 %200 }
 0x216   :  { %v203_v13 = vmul.f32 %v201_v12, %v184_v11 }
 0x218   :  { %205 = vst.msk [vmem:[#allocation2] sm:$0x3] %vm204_vm9, %v203_v13  ;;  %1054 = vmatmul.msk.f32.vlgmr.msra.gmra.mxu2 %vm79_vm0, %v203_v13  ;;  %1055 = vmatmul.msk.f32.vlgmr.msra.gmra.mxu3 %vm79_vm0, %v203_v13 }
 0x219   :  { %207 = vst.msk [vmem:[#allocation2 + $0xe] sm:$0x3] %vm206_vm10, %v203_v13  ;;  %670 = vmatpush.msra.mxu2 %v1313_v43  ;;  %690 = vmatpush.msra.mxu3 %v1315_v44 }
 0x21b   :  { %671 = vmatpush.msra.mxu2 %v1317_v45  ;;  %691 = vmatpush.msra.mxu3 %v1321_v46 }
 0x21d   :  { %672 = vmatpush.msra.mxu2 %v1323_v47  ;;  %692 = vmatpush.msra.mxu3 %v1325_v48 }
 0x21f   :  { %673 = vmatpush.msra.mxu2 %v1331_v49  ;;  %693 = vmatpush.msra.mxu3 %v1333_v50 }
 0x221   :  { %674 = vmatpush.msra.mxu2 %v1339_v51  ;;  %694 = vmatpush.msra.mxu3 %v1341_v52 }
 0x223   :  { %675 = vmatpush.msra.mxu2 %v1347_v53  ;;  %695 = vmatpush.msra.mxu3 %v1349_v54 }
 0x225   :  { %676 = vmatpush.msra.mxu2 %v1355_v55  ;;  %696 = vmatpush.msra.mxu3 %v1357_v56 }
 0x227   :  { %677 = vmatpush.msra.mxu2 %v1374_v0  ;;  %697 = vmatpush.msra.mxu3 %v1376_v1 }
 0x29b   :  { %v248_v14 = vpop.f32.mrf.mxu3  ;;  %v228_v18 = vpop.f32.mrf.mxu2 }
 0x29c   :  { %v254_v15 = vrot.slane %v248_v14, 6  ;;  %v253_v20 = vrot.slane %v228_v18, 6  ;;  %v1463_v14 = vpop.f32.mrf.mxu1 }
 0x29e   :  { %v258_v16 = vadd.f32 %v254_v15, %v1305_v25  ;;  %v257_v21 = vadd.f32 %v253_v20, %v1309_v27 }
 0x2a0   :  { %1102 = vtanh.f32 %v258_v16  ;;  %v1056_v24 = vmul.f32 -1.442695, %v257_v21  ;;  %v1057_v61 = vmul.f32 -1.442695, %v258_v16 }
 0x2a2   :  { %1104 = vpow2.f32 %v1056_v24 }
 0x2a6   :  { %v1103_v17 = vpop.eup %1102 }
 0x2a7   :  { %303 = vrot.lane.b32.xlu1 %v1103_v17, %s1242_s0 }
 0x2a8   :  { %v1105_v26 = vpop.eup %1104 }
 0x2a9   :  { %v265_v28 = vadd.f32 1.0, %v1105_v26 }
 0x2ab   :  { %1106 = vrcp.f32 %v265_v28  ;;  %v278_v34 = vand.u32 2147483648, %v265_v28  ;;  %vm272_vm12 = vweird.f32 %v265_v28  ;;  %v276_v35 = vand.u32 2147483647, %v265_v28 }
 0x2ad   :  { %v279_v37 = vor.u32 1.1754944e-38, %v278_v34  ;;  %vm277_vm14 = vcmp.eq.f32.partialorder %v276_v35, 8.507059e+37 }
 0x2b1   :  { %v1107_v29 = vpop.eup %1106 }
 0x2b2   :  { %v268_v30 = vmul.f32 %v1107_v29, %v265_v28  ;;  %vm273_vm11 = vweird.f32 %v1107_v29 }
 0x2b3   :  { %vm274_vm13 = vmor %vm272_vm12, %vm273_vm11 }
 0x2b4   :  { %v269_v31 = vsub.f32 1.0, %v268_v30 }
 0x2b6   :  { %v270_v32 = vmul.f32 %v1107_v29, %v269_v31 }
 0x2b8   :  { %v271_v33 = vadd.f32 %v1107_v29, %v270_v32 }
 0x2ba   :  { %v275_v36 = vsel %vm274_vm13, %v1107_v29, %v271_v33 }
 0x2bb   :  { %v280_v39 = vsel %vm277_vm14, %v279_v37, %v275_v36 }
 0x2bc   :  { %v301_v42 = vmul.f32 %v299_v41, %v280_v39 }
 0x319   :  { %v304_v38 = vpop.permute.xlu1 %303 }
 0x31a   :  { %v306_v40 = vmul.f32 %v304_v38, %v280_v39 }
 0x31c   :  { %308 = vrot.lane.b32.xlu2 %v306_v40, %s1242_s0 }
 0x376   :  { %v309_v57 = vpop.permute.xlu2 %308 }
 0x377   :  { %v1439_v58 = vadd.f32 %v309_v57, %v301_v42 }
 0x379   :  { %1108 = vtanh.f32 %v1439_v58  ;;  %v414_v42 = vrot.slane %v1439_v58, 6 }
 0x37a   :  { %1110 = vpow2.f32 %v1057_v61 }
 0x37f   :  { %v1109_v60 = vpop.eup %1108 }
 0x380   :  { %314 = vrot.lane.b32.xlu2 %v1109_v60, %s1242_s0  ;;  %v1111_v62 = vpop.eup %1110 }
 0x381   :  { %v266_v63 = vadd.f32 1.0, %v1111_v62 }
 0x383   :  { %1112 = vrcp.f32 %v266_v63  ;;  %v293_v59 = vand.u32 2147483648, %v266_v63  ;;  %vm287_vm1 = vweird.f32 %v266_v63  ;;  %v291_v7 = vand.u32 2147483647, %v266_v63 }
 0x385   :  { %v294_v9 = vor.u32 1.1754944e-38, %v293_v59  ;;  %vm292_vm3 = vcmp.eq.f32.partialorder %v291_v7, 8.507059e+37 }
 0x389   :  { %v1113_v2 = vpop.eup %1112 }
 0x38a   :  { %v283_v3 = vmul.f32 %v1113_v2, %v266_v63  ;;  %vm288_vm15 = vweird.f32 %v1113_v2 }
 0x38b   :  { %vm289_vm2 = vmor %vm287_vm1, %vm288_vm15  ;;  %vm433_vm1 = vcmask 259076  }
 0x38c   :  { %v284_v4 = vsub.f32 1.0, %v283_v3 }
 0x38e   :  { %v285_v5 = vmul.f32 %v1113_v2, %v284_v4 }
 0x390   :  { %v286_v6 = vadd.f32 %v1113_v2, %v285_v5 }
 0x392   :  { %v290_v8 = vsel %vm289_vm2, %v1113_v2, %v286_v6  ;;  %vm435_vm2 = vcmask 521476  }
 0x393   :  { %v295_v10 = vsel %vm292_vm3, %v294_v9, %v290_v8 }
 0x3da   :  { %v315_v11 = vpop.permute.xlu2 %314 }
 0x3db   :  { %v317_v12 = vmul.f32 %v315_v11, %v295_v10 }
 0x3dd   :  { %319 = vst.msk [vmem:[#allocation2] sm:$0xc] %vm318_vm4, %v317_v12  ;;  %v323_v13 = vrot.slane %v317_v12, 2 }
 0x3de   :  { %321 = vst.msk [vmem:[#allocation2 + $0xa] sm:$0xc] %vm320_vm5, %v317_v12 }
 0x3df   :  { %1058 = vmatmul.msk.f32.vlgmr.msra.gmra.mxu0 %vm79_vm0, %v323_v13  ;;  %1059 = vmatmul.msk.f32.vlgmr.msra.gmra.mxu1 %vm79_vm0, %v323_v13 }
 0x3e0   :  { %783 = vmatpush.msra.mxu0 %v1313_v43  ;;  %803 = vmatpush.msra.mxu1 %v1315_v44 }
 0x3e2   :  { %784 = vmatpush.msra.mxu0 %v1317_v45  ;;  %804 = vmatpush.msra.mxu1 %v1321_v46 }
 0x3e4   :  { %785 = vmatpush.msra.mxu0 %v1323_v47  ;;  %805 = vmatpush.msra.mxu1 %v1325_v48 }
 0x3e6   :  { %786 = vmatpush.msra.mxu0 %v1331_v49  ;;  %806 = vmatpush.msra.mxu1 %v1333_v50 }
 0x3e8   :  { %787 = vmatpush.msra.mxu0 %v1339_v51  ;;  %807 = vmatpush.msra.mxu1 %v1341_v52 }
 0x3ea   :  { %788 = vmatpush.msra.mxu0 %v1347_v53  ;;  %808 = vmatpush.msra.mxu1 %v1349_v54 }
 0x3ec   :  { %789 = vmatpush.msra.mxu0 %v1355_v55  ;;  %809 = vmatpush.msra.mxu1 %v1357_v56 }
 0x3ee   :  { %790 = vmatpush.msra.mxu0 %v1374_v0  ;;  %810 = vmatpush.msra.mxu1 %v1376_v1 }
 0x45c   :  { %v363_v15 = vpop.f32.mrf.mxu1  ;;  %v343_v20 = vpop.f32.mrf.mxu0 }
 0x45d   :  { %v369_v16 = vrot.slane %v363_v15, 4  ;;  %v368_v21 = vrot.slane %v343_v20, 4 }
 0x45f   :  { %v373_v17 = vadd.f32 %v369_v16, %v1305_v25  ;;  %v372_v24 = vadd.f32 %v368_v21, %v1309_v27 }
 0x461   :  { %1114 = vtanh.f32 %v373_v17  ;;  %v1060_v26 = vmul.f32 -1.442695, %v372_v24  ;;  %v1061_v63 = vmul.f32 -1.442695, %v373_v17 }
 0x463   :  { %1116 = vpow2.f32 %v1060_v26 }
 0x467   :  { %v1115_v18 = vpop.eup %1114 }
 0x468   :  { %418 = vrot.lane.b32.xlu0 %v1115_v18, %s1242_s0 }
 0x469   :  { %v1117_v28 = vpop.eup %1116 }
 0x46a   :  { %v380_v29 = vadd.f32 1.0, %v1117_v28 }
 0x46c   :  { %1118 = vrcp.f32 %v380_v29  ;;  %v393_v35 = vand.u32 2147483648, %v380_v29  ;;  %vm387_vm7 = vweird.f32 %v380_v29  ;;  %v391_v36 = vand.u32 2147483647, %v380_v29 }
 0x46e   :  { %v394_v38 = vor.u32 1.1754944e-38, %v393_v35  ;;  %vm392_vm11 = vcmp.eq.f32.partialorder %v391_v36, 8.507059e+37 }
 0x472   :  { %v1119_v30 = vpop.eup %1118 }
 0x473   :  { %v383_v31 = vmul.f32 %v1119_v30, %v380_v29  ;;  %vm388_vm6 = vweird.f32 %v1119_v30 }
 0x474   :  { %vm389_vm8 = vmor %vm387_vm7, %vm388_vm6 }
 0x475   :  { %v384_v32 = vsub.f32 1.0, %v383_v31 }
 0x477   :  { %v385_v33 = vmul.f32 %v1119_v30, %v384_v32 }
 0x479   :  { %v386_v34 = vadd.f32 %v1119_v30, %v385_v33 }
 0x47b   :  { %v390_v37 = vsel %vm389_vm8, %v1119_v30, %v386_v34 }
 0x47c   :  { %v395_v40 = vsel %vm392_vm11, %v394_v38, %v390_v37 }
 0x47d   :  { %v416_v57 = vmul.f32 %v414_v42, %v395_v40 }
 0x4da   :  { %v419_v39 = vpop.permute.xlu0 %418 }
 0x4db   :  { %v421_v41 = vmul.f32 %v419_v39, %v395_v40 }
 0x4dd   :  { %423 = vrot.lane.b32.xlu1 %v421_v41, %s1242_s0 }
 0x54f   :  { %v424_v60 = vpop.permute.xlu1 %423 }
 0x550   :  { %v1470_v61 = vadd.f32 %v424_v60, %v416_v57 }
 0x552   :  { %1120 = vtanh.f32 %v1470_v61  ;;  %v529_v21 = vrot.slane %v1470_v61, 6 }
 0x553   :  { %1122 = vpow2.f32 %v1061_v63 }
 0x558   :  { %v1121_v62 = vpop.eup %1120 }
 0x559   :  { %429 = vrot.lane.b32.xlu2 %v1121_v62, %s1242_s0  ;;  %v1123_v2 = vpop.eup %1122  ;;  %v1510_v62 = vadd.f32 %v1463_v14, %v76_v23 }
 0x55a   :  { %v381_v3 = vadd.f32 1.0, %v1123_v2 }
 0x55c   :  { %1124 = vrcp.f32 %v381_v3  ;;  %v408_v58 = vand.u32 2147483648, %v381_v3  ;;  %vm402_vm13 = vweird.f32 %v381_v3  ;;  %v406_v8 = vand.u32 2147483647, %v381_v3 }
 0x55e   :  { %v409_v10 = vor.u32 1.1754944e-38, %v408_v58  ;;  %vm407_vm15 = vcmp.eq.f32.partialorder %v406_v8, 8.507059e+37 }
 0x562   :  { %v1125_v4 = vpop.eup %1124 }
 0x563   :  { %v398_v5 = vmul.f32 %v1125_v4, %v381_v3  ;;  %vm403_vm12 = vweird.f32 %v1125_v4 }
 0x564   :  { %vm404_vm14 = vmor %vm402_vm13, %vm403_vm12 }
 0x565   :  { %v399_v6 = vsub.f32 1.0, %v398_v5 }
 0x567   :  { %v400_v59 = vmul.f32 %v1125_v4, %v399_v6 }
 0x569   :  { %v401_v7 = vadd.f32 %v1125_v4, %v400_v59 }
 0x56b   :  { %v405_v9 = vsel %vm404_vm14, %v1125_v4, %v401_v7 }
 0x56c   :  { %v410_v11 = vsel %vm407_vm15, %v409_v10, %v405_v9  ;;  %vm548_vm15 = vcmask 261126  }
 0x5b3   :  { %v430_v12 = vpop.permute.xlu2 %429 }
 0x5b4   :  { %v432_v13 = vmul.f32 %v430_v12, %v410_v11 }
 0x5b6   :  { %434 = vst.msk [vmem:[#allocation2] sm:$0x30] %vm433_vm1, %v432_v13  ;;  %v438_v15 = vrot.slane %v432_v13, 4 }
 0x5b7   :  { %436 = vst.msk [vmem:[#allocation2 + $0x6] sm:$0x30] %vm435_vm2, %v432_v13 }
 0x5b8   :  { %1062 = vmatmul.msk.f32.vlgmr.msrb.gmra.mxu2 %vm79_vm0, %v438_v15  ;;  %1063 = vmatmul.msk.f32.vlgmr.msrb.gmra.mxu3 %vm79_vm0, %v438_v15 }
 0x5b9   :  { %896 = vmatpush.msrb.mxu2 %v1313_v43  ;;  %916 = vmatpush.msrb.mxu3 %v1315_v44 }
 0x5bb   :  { %897 = vmatpush.msrb.mxu2 %v1317_v45  ;;  %917 = vmatpush.msrb.mxu3 %v1321_v46 }
 0x5bd   :  { %898 = vmatpush.msrb.mxu2 %v1323_v47  ;;  %918 = vmatpush.msrb.mxu3 %v1325_v48 }
 0x5bf   :  { %899 = vmatpush.msrb.mxu2 %v1331_v49  ;;  %919 = vmatpush.msrb.mxu3 %v1333_v50 }
 0x5c1   :  { %900 = vmatpush.msrb.mxu2 %v1339_v51  ;;  %920 = vmatpush.msrb.mxu3 %v1341_v52 }
 0x5c3   :  { %901 = vmatpush.msrb.mxu2 %v1347_v53  ;;  %921 = vmatpush.msrb.mxu3 %v1349_v54 }
 0x5c5   :  { %902 = vmatpush.msrb.mxu2 %v1355_v55  ;;  %922 = vmatpush.msrb.mxu3 %v1357_v56 }
 0x5c7   :  { %903 = vmatpush.msrb.mxu2 %v1374_v0  ;;  %923 = vmatpush.msrb.mxu3 %v1376_v1 }
 0x63b   :  { %v478_v43 = vpop.f32.mrf.mxu3  ;;  %v458_v47 = vpop.f32.mrf.mxu2 }
 0x63c   :  { %v484_v44 = vrot.slane %v478_v43, 2  ;;  %v483_v48 = vrot.slane %v458_v47, 2 }
 0x63e   :  { %v488_v45 = vadd.f32 %v484_v44, %v1305_v25  ;;  %v487_v49 = vadd.f32 %v483_v48, %v1309_v27 }
 0x640   :  { %1126 = vtanh.f32 %v488_v45  ;;  %v1064_v50 = vmul.f32 -1.442695, %v487_v49  ;;  %v1065_v30 = vmul.f32 -1.442695, %v488_v45 }
 0x642   :  { %1128 = vpow2.f32 %v1064_v50 }
 0x646   :  { %v1127_v46 = vpop.eup %1126 }
 0x647   :  { %533 = vrot.lane.b32.xlu0 %v1127_v46, %s1242_s0 }
 0x648   :  { %v1129_v51 = vpop.eup %1128 }
 0x649   :  { %v495_v52 = vadd.f32 1.0, %v1129_v51 }
 0x64b   :  { %1130 = vrcp.f32 %v495_v52  ;;  %v508_v25 = vand.u32 2147483648, %v495_v52  ;;  %vm502_vm6 = vweird.f32 %v495_v52  ;;  %v506_v1 = vand.u32 2147483647, %v495_v52 }
 0x64d   :  { %v509_v17 = vor.u32 1.1754944e-38, %v508_v25  ;;  %vm507_vm8 = vcmp.eq.f32.partialorder %v506_v1, 8.507059e+37 }
 0x651   :  { %v1131_v53 = vpop.eup %1130 }
 0x652   :  { %v498_v54 = vmul.f32 %v1131_v53, %v495_v52  ;;  %vm503_vm3 = vweird.f32 %v1131_v53 }
 0x653   :  { %vm504_vm7 = vmor %vm502_vm6, %vm503_vm3  ;;  %vm550_vm3 = vcmask 523526  }
 0x654   :  { %v499_v55 = vsub.f32 1.0, %v498_v54 }
 0x656   :  { %v500_v56 = vmul.f32 %v1131_v53, %v499_v55 }
 0x658   :  { %v501_v0 = vadd.f32 %v1131_v53, %v500_v56 }
 0x65a   :  { %v505_v16 = vsel %vm504_vm7, %v1131_v53, %v501_v0 }
 0x65b   :  { %v510_v27 = vsel %vm507_vm8, %v509_v17, %v505_v16 }
 0x65c   :  { %v531_v24 = vmul.f32 %v529_v21, %v510_v27 }
 0x6b9   :  { %v534_v18 = vpop.permute.xlu0 %533 }
 0x6ba   :  { %v536_v20 = vmul.f32 %v534_v18, %v510_v27 }
 0x6bc   :  { %538 = vrot.lane.b32.xlu1 %v536_v20, %s1242_s0 }
 0x72e   :  { %v539_v26 = vpop.permute.xlu1 %538 }
 0x72f   :  { %v1499_v28 = vadd.f32 %v539_v26, %v531_v24 }
 0x731   :  { %1132 = vtanh.f32 %v1499_v28  ;;  %v638_v44 = vrot.slane %v1499_v28, 6 }
 0x732   :  { %1134 = vpow2.f32 %v1065_v30 }
 0x737   :  { %v1133_v29 = vpop.eup %1132 }
 0x738   :  { %544 = vrot.lane.b32.xlu2 %v1133_v29, %s1242_s0  ;;  %v1135_v31 = vpop.eup %1134 }
 0x739   :  { %v496_v32 = vadd.f32 1.0, %v1135_v31 }
 0x73b   :  { %1136 = vrcp.f32 %v496_v32  ;;  %v523_v38 = vand.u32 2147483648, %v496_v32  ;;  %vm517_vm12 = vweird.f32 %v496_v32  ;;  %v521_v39 = vand.u32 2147483647, %v496_v32 }
 0x73d   :  { %v524_v41 = vor.u32 1.1754944e-38, %v523_v38  ;;  %vm522_vm14 = vcmp.eq.f32.partialorder %v521_v39, 8.507059e+37 }
 0x741   :  { %v1137_v33 = vpop.eup %1136 }
 0x742   :  { %v513_v34 = vmul.f32 %v1137_v33, %v496_v32  ;;  %vm518_vm11 = vweird.f32 %v1137_v33 }
 0x743   :  { %vm519_vm13 = vmor %vm517_vm12, %vm518_vm11 }
 0x744   :  { %v514_v35 = vsub.f32 1.0, %v513_v34 }
 0x746   :  { %v515_v36 = vmul.f32 %v1137_v33, %v514_v35 }
 0x748   :  { %v516_v37 = vadd.f32 %v1137_v33, %v515_v36 }
 0x74a   :  { %v520_v40 = vsel %vm519_vm13, %v1137_v33, %v516_v37 }
 0x74b   :  { %v525_v42 = vsel %vm522_vm14, %v524_v41, %v520_v40 }
 0x792   :  { %v545_v57 = vpop.permute.xlu2 %544 }
 0x793   :  { %v547_v60 = vmul.f32 %v545_v57, %v525_v42 }
 0x795   :  { %549 = vst.msk [vmem:[#allocation2] sm:$0xc0] %vm548_vm15, %v547_v60  ;;  %v553_v61 = vrot.slane %v547_v60, 6 }
 0x796   :  { %551 = vst.msk [vmem:[#allocation2 + $0x2] sm:$0xc0] %vm550_vm3, %v547_v60 }
 0x797   :  { %1066 = vmatmul.msk.f32.vlgmr.msrb.gmra.mxu0 %vm79_vm0, %v553_v61  ;;  %1067 = vmatmul.msk.f32.vlgmr.msrb.gmra.mxu1 %vm79_vm0, %v553_v61 }
 0x814   :  { %v593_v63 = vpop.f32.mrf.mxu1  ;;  %v573_v4 = vpop.f32.mrf.mxu0 }
 0x815   :  { %v597_v2 = vadd.f32 %v593_v63, %v1510_v62  ;;  %v596_v5 = vadd.f32 %v573_v4, %v1300_v22 }
 0x817   :  { %1138 = vtanh.f32 %v597_v2  ;;  %v1068_v6 = vmul.f32 -1.442695, %v596_v5  ;;  %v1069_v49 = vmul.f32 -1.442695, %v597_v2 }
 0x819   :  { %1140 = vpow2.f32 %v1068_v6 }
 0x81d   :  { %v1139_v3 = vpop.eup %1138 }
 0x81e   :  { %642 = vrot.lane.b32.xlu0 %v1139_v3, %s1242_s0 }
 0x81f   :  { %v1141_v59 = vpop.eup %1140 }
 0x820   :  { %v604_v7 = vadd.f32 1.0, %v1141_v59 }
 0x822   :  { %1142 = vrcp.f32 %v604_v7  ;;  %v617_v9 = vand.u32 2147483648, %v604_v7  ;;  %vm611_vm7 = vweird.f32 %v604_v7  ;;  %v615_v10 = vand.u32 2147483647, %v604_v7 }
 0x824   :  { %v618_v12 = vor.u32 1.1754944e-38, %v617_v9  ;;  %vm616_vm11 = vcmp.eq.f32.partialorder %v615_v10, 8.507059e+37 }
 0x828   :  { %v1143_v58 = vpop.eup %1142 }
 0x829   :  { %v607_v19 = vmul.f32 %v1143_v58, %v604_v7  ;;  %vm612_vm6 = vweird.f32 %v1143_v58 }
 0x82a   :  { %vm613_vm8 = vmor %vm611_vm7, %vm612_vm6 }
 0x82b   :  { %v608_v8 = vsub.f32 1.0, %v607_v19 }
 0x82d   :  { %v609_v23 = vmul.f32 %v1143_v58, %v608_v8 }
 0x82f   :  { %v610_v14 = vadd.f32 %v1143_v58, %v609_v23 }
 0x831   :  { %v614_v11 = vsel %vm613_vm8, %v1143_v58, %v610_v14 }
 0x832   :  { %v619_v15 = vsel %vm616_vm11, %v618_v12, %v614_v11 }
 0x833   :  { %v640_v45 = vmul.f32 %v638_v44, %v619_v15 }
 0x890   :  { %v643_v13 = vpop.permute.xlu0 %642 }
 0x891   :  { %v645_v43 = vmul.f32 %v643_v13, %v619_v15 }
 0x893   :  { %647 = vrot.lane.b32.xlu1 %v645_v43, %s1242_s0 }
 0x905   :  { %v648_v46 = vpop.permute.xlu1 %647 }
 0x906   :  { %v650_v47 = vadd.f32 %v648_v46, %v640_v45 }
 0x908   :  { %1144 = vtanh.f32 %v650_v47  ;;  %v750_v63 = vrot.slane %v650_v47, 6 }
 0x909   :  { %1146 = vpow2.f32 %v1069_v49 }
 0x90e   :  { %v1145_v48 = vpop.eup %1144 }
 0x90f   :  { %653 = vrot.lane.b32.xlu2 %v1145_v48, %s1242_s0  ;;  %v1147_v50 = vpop.eup %1146 }
 0x910   :  { %v605_v51 = vadd.f32 1.0, %v1147_v50 }
 0x912   :  { %1148 = vrcp.f32 %v605_v51  ;;  %v632_v0 = vand.u32 2147483648, %v605_v51  ;;  %vm626_vm13 = vweird.f32 %v605_v51  ;;  %v630_v25 = vand.u32 2147483647, %v605_v51 }
 0x914   :  { %v633_v16 = vor.u32 1.1754944e-38, %v632_v0  ;;  %vm631_vm6 = vcmp.eq.f32.partialorder %v630_v25, 8.507059e+37 }
 0x918   :  { %v1149_v52 = vpop.eup %1148 }
 0x919   :  { %v622_v53 = vmul.f32 %v1149_v52, %v605_v51  ;;  %vm627_vm12 = vweird.f32 %v1149_v52 }
 0x91a   :  { %vm628_vm14 = vmor %vm626_vm13, %vm627_vm12 }
 0x91b   :  { %v623_v54 = vsub.f32 1.0, %v622_v53 }
 0x91d   :  { %v624_v55 = vmul.f32 %v1149_v52, %v623_v54 }
 0x91f   :  { %v625_v56 = vadd.f32 %v1149_v52, %v624_v55 }
 0x921   :  { %v629_v1 = vsel %vm628_vm14, %v1149_v52, %v625_v56 }
 0x922   :  { %v634_v17 = vsel %vm631_vm6, %v633_v16, %v629_v1 }
 0x969   :  { %v654_v18 = vpop.permute.xlu2 %653 }
 0x96a   :  { %v656_v27 = vmul.f32 %v654_v18, %v634_v17 }
 0x96c   :  { %657 = vst.msk [vmem:[#allocation2 + $0x8] sm:$0x3] %vm204_vm9, %v656_v27  ;;  %1070 = vmatmul.msk.f32.vlgmr.msra.gmra.mxu2 %vm79_vm0, %v656_v27  ;;  %1071 = vmatmul.msk.f32.vlgmr.msra.gmra.mxu3 %vm79_vm0, %v656_v27 }
 0x96d   :  { %658 = vst.msk [vmem:[#allocation2 + $0x6] sm:$0x3] %vm206_vm10, %v656_v27 }
 0x9ef   :  { %v699_v20 = vpop.f32.mrf.mxu3  ;;  %v679_v28 = vpop.f32.mrf.mxu2 }
 0x9f0   :  { %v705_v21 = vrot.slane %v699_v20, 6  ;;  %v704_v29 = vrot.slane %v679_v28, 6 }
 0x9f2   :  { %v709_v24 = vadd.f32 %v705_v21, %v1510_v62  ;;  %v708_v30 = vadd.f32 %v704_v29, %v1300_v22 }
 0x9f4   :  { %1150 = vtanh.f32 %v709_v24  ;;  %v1072_v31 = vmul.f32 -1.442695, %v708_v30  ;;  %v1073_v6 = vmul.f32 -1.442695, %v709_v24 }
 0x9f6   :  { %1152 = vpow2.f32 %v1072_v31 }
 0x9fa   :  { %v1151_v26 = vpop.eup %1150 }
 0x9fb   :  { %754 = vrot.lane.b32.xlu0 %v1151_v26, %s1242_s0 }
 0x9fc   :  { %v1153_v32 = vpop.eup %1152 }
 0x9fd   :  { %v716_v33 = vadd.f32 1.0, %v1153_v32 }
 0x9ff   :  { %1154 = vrcp.f32 %v716_v33  ;;  %v729_v39 = vand.u32 2147483648, %v716_v33  ;;  %vm723_vm10 = vweird.f32 %v716_v33  ;;  %v727_v40 = vand.u32 2147483647, %v716_v33 }
 0xa01   :  { %v730_v42 = vor.u32 1.1754944e-38, %v729_v39  ;;  %vm728_vm8 = vcmp.eq.f32.partialorder %v727_v40, 8.507059e+37 }
 0xa05   :  { %v1155_v34 = vpop.eup %1154 }
 0xa06   :  { %v719_v35 = vmul.f32 %v1155_v34, %v716_v33  ;;  %vm724_vm9 = vweird.f32 %v1155_v34 }
 0xa07   :  { %vm725_vm7 = vmor %vm723_vm10, %vm724_vm9 }
 0xa08   :  { %v720_v36 = vsub.f32 1.0, %v719_v35 }
 0xa0a   :  { %v721_v37 = vmul.f32 %v1155_v34, %v720_v36 }
 0xa0c   :  { %v722_v38 = vadd.f32 %v1155_v34, %v721_v37 }
 0xa0e   :  { %v726_v41 = vsel %vm725_vm7, %v1155_v34, %v722_v38 }
 0xa0f   :  { %v731_v60 = vsel %vm728_vm8, %v730_v42, %v726_v41 }
 0xa10   :  { %v752_v2 = vmul.f32 %v750_v63, %v731_v60 }
 0xa6d   :  { %v755_v57 = vpop.permute.xlu0 %754 }
 0xa6e   :  { %v757_v61 = vmul.f32 %v755_v57, %v731_v60 }
 0xa70   :  { %759 = vrot.lane.b32.xlu1 %v757_v61, %s1242_s0 }
 0xae2   :  { %v760_v3 = vpop.permute.xlu1 %759 }
 0xae3   :  { %v1526_v4 = vadd.f32 %v760_v3, %v752_v2 }
 0xae5   :  { %1156 = vtanh.f32 %v1526_v4  ;;  %v863_v26 = vrot.slane %v1526_v4, 6 }
 0xae6   :  { %1158 = vpow2.f32 %v1073_v6 }
 0xaeb   :  { %v1157_v5 = vpop.eup %1156 }
 0xaec   :  { %765 = vrot.lane.b32.xlu2 %v1157_v5, %s1242_s0  ;;  %v1159_v59 = vpop.eup %1158 }
 0xaed   :  { %v717_v7 = vadd.f32 1.0, %v1159_v59 }
 0xaef   :  { %1160 = vrcp.f32 %v717_v7  ;;  %v744_v9 = vand.u32 2147483648, %v717_v7  ;;  %vm738_vm12 = vweird.f32 %v717_v7  ;;  %v742_v10 = vand.u32 2147483647, %v717_v7 }
 0xaf1   :  { %v745_v12 = vor.u32 1.1754944e-38, %v744_v9  ;;  %vm743_vm14 = vcmp.eq.f32.partialorder %v742_v10, 8.507059e+37 }
 0xaf5   :  { %v1161_v58 = vpop.eup %1160 }
 0xaf6   :  { %v734_v19 = vmul.f32 %v1161_v58, %v717_v7  ;;  %vm739_vm11 = vweird.f32 %v1161_v58 }
 0xaf7   :  { %vm740_vm13 = vmor %vm738_vm12, %vm739_vm11 }
 0xaf8   :  { %v735_v8 = vsub.f32 1.0, %v734_v19 }
 0xafa   :  { %v736_v23 = vmul.f32 %v1161_v58, %v735_v8 }
 0xafc   :  { %v737_v14 = vadd.f32 %v1161_v58, %v736_v23 }
 0xafe   :  { %v741_v11 = vsel %vm740_vm13, %v1161_v58, %v737_v14 }
 0xaff   :  { %v746_v13 = vsel %vm743_vm14, %v745_v12, %v741_v11 }
 0xb46   :  { %v766_v15 = vpop.permute.xlu2 %765 }
 0xb47   :  { %v768_v43 = vmul.f32 %v766_v15, %v746_v13 }
 0xb49   :  { %769 = vst.msk [vmem:[#allocation2 + $0x8] sm:$0xc] %vm318_vm4, %v768_v43  ;;  %v772_v44 = vrot.slane %v768_v43, 2 }
 0xb4a   :  { %770 = vst.msk [vmem:[#allocation2 + $0x2] sm:$0xc] %vm320_vm5, %v768_v43 }
 0xb4b   :  { %1074 = vmatmul.msk.f32.vlgmr.msra.gmra.mxu0 %vm79_vm0, %v772_v44  ;;  %1075 = vmatmul.msk.f32.vlgmr.msra.gmra.mxu1 %vm79_vm0, %v772_v44 }
 0xbc8   :  { %v812_v45 = vpop.f32.mrf.mxu1  ;;  %v792_v49 = vpop.f32.mrf.mxu0 }
 0xbc9   :  { %v818_v46 = vrot.slane %v812_v45, 4  ;;  %v817_v50 = vrot.slane %v792_v49, 4 }
 0xbcb   :  { %v822_v47 = vadd.f32 %v818_v46, %v1510_v62  ;;  %v821_v51 = vadd.f32 %v817_v50, %v1300_v22  ;;  %v1006_v46 = vld [vmem:[%s1594_s4 + $0x38] sm:$0xff] }
 0xbcc   :  { %1025 = vmatpush.msrb.mxu0 %v1006_v46 }
 0xbcd   :  { %1162 = vtanh.f32 %v822_v47  ;;  %v1076_v52 = vmul.f32 -1.442695, %v821_v51  ;;  %v1077_v32 = vmul.f32 -1.442695, %v822_v47  ;;  %v1005_v47 = vld [vmem:[%s1594_s4 + $0x30] sm:$0xff] }
 0xbce   :  { %1026 = vmatpush.msrb.mxu0 %v1005_v47 }
 0xbcf   :  { %1164 = vpow2.f32 %v1076_v52 }
 0xbd3   :  { %v1163_v48 = vpop.eup %1162 }
 0xbd4   :  { %867 = vrot.lane.b32.xlu0 %v1163_v48, %s1242_s0  ;;  %v1004_v48 = vld [vmem:[%s1594_s4 + $0x28] sm:$0xff] }
 0xbd5   :  { %v1165_v53 = vpop.eup %1164  ;;  %1027 = vmatpush.msrb.mxu0 %v1004_v48 }
 0xbd6   :  { %v829_v54 = vadd.f32 1.0, %v1165_v53 }
 0xbd8   :  { %1166 = vrcp.f32 %v829_v54  ;;  %v842_v16 = vand.u32 2147483648, %v829_v54  ;;  %vm836_vm5 = vweird.f32 %v829_v54  ;;  %v840_v17 = vand.u32 2147483647, %v829_v54 }
 0xbda   :  { %v843_v27 = vor.u32 1.1754944e-38, %v842_v16  ;;  %vm841_vm9 = vcmp.eq.f32.partialorder %v840_v17, 8.507059e+37  ;;  %v1000_v16 = vld [vmem:[%s1594_s4 + $0x8] sm:$0xff]  ;;  %v999_v17 = vld [vmem:[%s1594_s4] sm:$0xff] }
 0xbde   :  { %v1167_v55 = vpop.eup %1166 }
 0xbdf   :  { %v832_v56 = vmul.f32 %v1167_v55, %v829_v54  ;;  %vm837_vm4 = vweird.f32 %v1167_v55 }
 0xbe0   :  { %vm838_vm6 = vmor %vm836_vm5, %vm837_vm4 }
 0xbe1   :  { %v833_v0 = vsub.f32 1.0, %v832_v56 }
 0xbe3   :  { %v834_v25 = vmul.f32 %v1167_v55, %v833_v0  ;;  %v1003_v0 = vld [vmem:[%s1594_s4 + $0x20] sm:$0xff] }
 0xbe4   :  { %1028 = vmatpush.msrb.mxu0 %v1003_v0 }
 0xbe5   :  { %v835_v1 = vadd.f32 %v1167_v55, %v834_v25  ;;  %v1002_v25 = vld [vmem:[%s1594_s4 + $0x18] sm:$0xff] }
 0xbe6   :  { %1029 = vmatpush.msrb.mxu0 %v1002_v25 }
 0xbe7   :  { %v839_v18 = vsel %vm838_vm6, %v1167_v55, %v835_v1  ;;  %v1001_v1 = vld [vmem:[%s1594_s4 + $0x10] sm:$0xff] }
 0xbe8   :  { %v844_v21 = vsel %vm841_vm9, %v843_v27, %v839_v18  ;;  %1030 = vmatpush.msrb.mxu0 %v1001_v1 }
 0xbe9   :  { %v865_v28 = vmul.f32 %v863_v26, %v844_v21 }
 0xbea   :  { %1031 = vmatpush.msrb.mxu0 %v1000_v16 }
 0xbec   :  { %1032 = vmatpush.msrb.mxu0 %v999_v17 }
 0xc46   :  { %v868_v20 = vpop.permute.xlu0 %867 }
 0xc47   :  { %v870_v24 = vmul.f32 %v868_v20, %v844_v21 }
 0xc49   :  { %872 = vrot.lane.b32.xlu1 %v870_v24, %s1242_s0 }
 0xcbb   :  { %v873_v29 = vpop.permute.xlu1 %872 }
 0xcbc   :  { %v1539_v30 = vadd.f32 %v873_v29, %v865_v28 }
 0xcbe   :  { %1168 = vtanh.f32 %v1539_v30  ;;  %v976_v49 = vrot.slane %v1539_v30, 6 }
 0xcbf   :  { %1170 = vpow2.f32 %v1077_v32 }
 0xcc4   :  { %v1169_v31 = vpop.eup %1168 }
 0xcc5   :  { %878 = vrot.lane.b32.xlu2 %v1169_v31, %s1242_s0  ;;  %v1171_v33 = vpop.eup %1170 }
 0xcc6   :  { %v830_v34 = vadd.f32 1.0, %v1171_v33 }
 0xcc8   :  { %1172 = vrcp.f32 %v830_v34  ;;  %v857_v40 = vand.u32 2147483648, %v830_v34  ;;  %vm851_vm7 = vweird.f32 %v830_v34  ;;  %v855_v41 = vand.u32 2147483647, %v830_v34 }
 0xcca   :  { %v858_v57 = vor.u32 1.1754944e-38, %v857_v40  ;;  %vm856_vm11 = vcmp.eq.f32.partialorder %v855_v41, 8.507059e+37 }
 0xcce   :  { %v1173_v35 = vpop.eup %1172 }
 0xccf   :  { %v847_v36 = vmul.f32 %v1173_v35, %v830_v34  ;;  %vm852_vm10 = vweird.f32 %v1173_v35 }
 0xcd0   :  { %vm853_vm8 = vmor %vm851_vm7, %vm852_vm10 }
 0xcd1   :  { %v848_v37 = vsub.f32 1.0, %v847_v36  ;;  %v1089_v36 = vld [vmem:[%s1595_s5] ss:$0 sm:$0xff] }
 0xcd3   :  { %v849_v38 = vmul.f32 %v1173_v35, %v848_v37 }
 0xcd5   :  { %v850_v39 = vadd.f32 %v1173_v35, %v849_v38 }
 0xcd7   :  { %v854_v42 = vsel %vm853_vm8, %v1173_v35, %v850_v39 }
 0xcd8   :  { %v859_v60 = vsel %vm856_vm11, %v858_v57, %v854_v42 }
 0xd1f   :  { %v879_v61 = vpop.permute.xlu2 %878 }
 0xd20   :  { %v881_v63 = vmul.f32 %v879_v61, %v859_v60 }
 0xd22   :  { %882 = vst.msk [vmem:[#allocation2 + $0x8] sm:$0x30] %vm433_vm1, %v881_v63  ;;  %v885_v2 = vrot.slane %v881_v63, 4 }
 0xd23   :  { %883 = vst.msk [vmem:[#allocation2 - $0x2] sm:$0x30] %vm435_vm2, %v881_v63 }
 0xd24   :  { %1078 = vmatmul.msk.f32.vlgmr.msrb.gmra.mxu2 %vm79_vm0, %v885_v2  ;;  %1079 = vmatmul.msk.f32.vlgmr.msrb.gmra.mxu3 %vm79_vm0, %v885_v2 }
 0xda7   :  { %v925_v3 = vpop.f32.mrf.mxu3  ;;  %v905_v59 = vpop.f32.mrf.mxu2 }
 0xda8   :  { %v931_v4 = vrot.slane %v925_v3, 2  ;;  %v930_v7 = vrot.slane %v905_v59, 2 }
 0xdaa   :  { %v935_v5 = vadd.f32 %v931_v4, %v1510_v62  ;;  %v934_v58 = vadd.f32 %v930_v7, %v1300_v22 }
 0xdac   :  { %1174 = vtanh.f32 %v935_v5  ;;  %v1080_v19 = vmul.f32 -1.442695, %v934_v58  ;;  %v1081_v54 = vmul.f32 -1.442695, %v935_v5 }
 0xdae   :  { %1176 = vpow2.f32 %v1080_v19 }
 0xdb2   :  { %v1175_v6 = vpop.eup %1174 }
 0xdb3   :  { %980 = vrot.lane.b32.xlu0 %v1175_v6, %s1242_s0 }
 0xdb4   :  { %v1177_v8 = vpop.eup %1176 }
 0xdb5   :  { %v942_v23 = vadd.f32 1.0, %v1177_v8 }
 0xdb7   :  { %1178 = vrcp.f32 %v942_v23  ;;  %v955_v62 = vand.u32 2147483648, %v942_v23  ;;  %vm949_vm2 = vweird.f32 %v942_v23  ;;  %v953_v13 = vand.u32 2147483647, %v942_v23 }
 0xdb9   :  { %v956_v43 = vor.u32 1.1754944e-38, %v955_v62  ;;  %vm954_vm13 = vcmp.eq.f32.partialorder %v953_v13, 8.507059e+37 }
 0xdbd   :  { %v1179_v14 = vpop.eup %1178 }
 0xdbe   :  { %v945_v9 = vmul.f32 %v1179_v14, %v942_v23  ;;  %vm950_vm1 = vweird.f32 %v1179_v14 }
 0xdbf   :  { %vm951_vm12 = vmor %vm949_vm2, %vm950_vm1 }
 0xdc0   :  { %v946_v10 = vsub.f32 1.0, %v945_v9 }
 0xdc2   :  { %v947_v11 = vmul.f32 %v1179_v14, %v946_v10 }
 0xdc4   :  { %v948_v12 = vadd.f32 %v1179_v14, %v947_v11 }
 0xdc6   :  { %v952_v15 = vsel %vm951_vm12, %v1179_v14, %v948_v12 }
 0xdc7   :  { %v957_v22 = vsel %vm954_vm13, %v956_v43, %v952_v15 }
 0xdc8   :  { %v978_v50 = vmul.f32 %v976_v49, %v957_v22 }
 0xe25   :  { %v981_v44 = vpop.permute.xlu0 %980 }
 0xe26   :  { %v983_v45 = vmul.f32 %v981_v44, %v957_v22 }
 0xe28   :  { %985 = vrot.lane.b32.xlu1 %v983_v45, %s1242_s0 }
 0xe9a   :  { %v986_v51 = vpop.permute.xlu1 %985 }
 0xe9b   :  { %v988_v52 = vadd.f32 %v986_v51, %v978_v50 }
 0xe9d   :  { %1180 = vtanh.f32 %v988_v52 }
 0xe9e   :  { %1182 = vpow2.f32 %v1081_v54 }
 0xea3   :  { %v1181_v53 = vpop.eup %1180 }
 0xea4   :  { %991 = vrot.lane.b32.xlu2 %v1181_v53, %s1242_s0  ;;  %v1183_v55 = vpop.eup %1182 }
 0xea5   :  { %v943_v56 = vadd.f32 1.0, %v1183_v55 }
 0xea7   :  { %1184 = vrcp.f32 %v943_v56  ;;  %v970_v26 = vand.u32 2147483648, %v943_v56  ;;  %vm964_vm4 = vweird.f32 %v943_v56  ;;  %v968_v28 = vand.u32 2147483647, %v943_v56 }
 0xea9   :  { %v971_v30 = vor.u32 1.1754944e-38, %v970_v26  ;;  %vm969_vm6 = vcmp.eq.f32.partialorder %v968_v28, 8.507059e+37 }
 0xead   :  { %v1185_v18 = vpop.eup %1184 }
 0xeae   :  { %v960_v27 = vmul.f32 %v1185_v18, %v943_v56  ;;  %vm965_vm14 = vweird.f32 %v1185_v18 }
 0xeaf   :  { %vm966_vm5 = vmor %vm964_vm4, %vm965_vm14 }
 0xeb0   :  { %v961_v20 = vsub.f32 1.0, %v960_v27 }
 0xeb2   :  { %v962_v21 = vmul.f32 %v1185_v18, %v961_v20 }
 0xeb4   :  { %v963_v24 = vadd.f32 %v1185_v18, %v962_v21 }
 0xeb6   :  { %v967_v29 = vsel %vm966_vm5, %v1185_v18, %v963_v24 }
 0xeb7   :  { %v972_v31 = vsel %vm969_vm6, %v971_v30, %v967_v29 }
 0xefe   :  { %v992_v32 = vpop.permute.xlu2 %991 }
 0xeff   :  { %v994_v33 = vmul.f32 %v992_v32, %v972_v31 }
 0xf01   :  { %995 = vst.msk [vmem:[#allocation2 + $0x8] sm:$0xc0] %vm548_vm15, %v994_v33 }
 0xf02   :  { %996 = vst.msk [vmem:[#allocation2 - $0x6] sm:$0xc0] %vm550_vm3, %v994_v33 }
 0xf08   :  { %v998_v35 = vld [vmem:[#allocation2 + $0x8] sm:$0xff] }
 0xf09   :  { %v997_v34 = vld [vmem:[#allocation2] sm:$0xff] }
 0xf0a   :  { %1082 = vmatmul.msk.f32.vlgmr.msrb.gmra.mxu0 %vm79_vm0, %v997_v34 }
 0xf12   :  { %1083 = vmatmul.msk.f32.gmra.mxu0 %vm79_vm0, %v998_v35 }
 0xf87   :  { %v1034_v37 = vpop.f32.mrf.mxu0 }
 0xf88   :  { %v1035_v38 = vadd.f32 %v1089_v36, %v1034_v37 }
 0xf8a   :  { %1040 = vst [vmem:[%s1596_s6] sm:$0xff] %v1035_v38 }
 0xf8f   :  { %v1037_v39 = vpop.f32.mrf.mxu0 }
 0xf90   :  { %v1038_v40 = vadd.f32 %v1089_v36, %v1037_v39 }
 0xf92   :  { %1041 = vst [vmem:[%s1596_s6 + $0x8] sm:$0xff] %v1038_v40 }
 0xf93   :  { %1046 = vsyncpa [#allocation4], 1 }
 0xf94   :  { %1047 = vsyncpa [#allocation6], 1 }

</bundles_post_ra>
